<compile_context>
chip_gen: v7x
topology: tpu7x:2x2x1
jax: 0.10.0
libtpu: 0.0.40
codegen_flags: <defaults>
</compile_context>

<pallas_src>
import functools

import jax
import jax.numpy as jnp
from jax import lax
from jax.experimental import pallas as pl
from jax.experimental.pallas import tpu as pltpu


def _round_up(a, b):
    return (a + b - 1) // b * b


def _vmem_budget_bytes():
    cap = 64 * 1024 * 1024
    try:
        info = pltpu.get_tpu_info()
        cap = int(getattr(info, "vmem_capacity_bytes", cap))
    except Exception:
        pass
    return (cap * 3) // 4  # leave headroom for Mosaic-internal scratch


def _cam_kernel(gamma_ref, x_ref, o_ref, acc_ref, att_ref, xcache_ref=None, *,
                valid_c, tn, mxu_dtype):
    phase = pl.program_id(1)
    nt = pl.program_id(2)
    last_nt = pl.num_programs(2) - 1
    c_pad = acc_ref.shape[0]

    # ---- phase 0: accumulate energy = x @ x^T over the N tiles -------------
    @pl.when((phase == 0) & (nt == 0))
    def _():
        acc_ref[...] = jnp.zeros_like(acc_ref)

    @pl.when(phase == 0)
    def _():
        x = x_ref[0]                               # (C_pad, tn) f32
        x_mxu = x.astype(mxu_dtype)
        # Contract the last (lane) dim of both operands: MXU consumes the
        # transposed-RHS feed natively -> no (tn, C) copy / XLU transpose.
        acc_ref[...] += lax.dot_general(
            x_mxu, x_mxu,
            dimension_numbers=(((1,), (1,)), ((), ())),
            preferred_element_type=jnp.float32)
        if xcache_ref is not None:
            start = pl.multiple_of(nt * tn, 128)
            xcache_ref[:, pl.ds(start, tn)] = x    # f32 cache: exact residual

    # ---- end of phase 0: energy accumulator -> attention (bf16 LHS) --------
    @pl.when((phase == 0) & (nt == last_nt))
    def _():
        energy = acc_ref[...]                      # (C_pad, C_pad) f32
        if valid_c != c_pad:
            # Padded channel columns hold 0; push them to +inf so they can
            # neither win the row-min nor contribute to the softmax.
            col = lax.broadcasted_iota(jnp.int32, energy.shape, 1)
            energy = jnp.where(col < valid_c, energy, jnp.inf)
        # softmax(rowmax(E) - E) stabilised == exp(rowmin(E) - E) / sum.
        # The arg-min column contributes exp(0) = 1, so denom >= 1:
        # no overflow and no zero denominator.  Padded cols -> exp(-inf) = 0.
        row_min = jnp.min(energy, axis=-1, keepdims=True)
        e = jnp.exp(row_min - energy)
        denom = jnp.sum(e, axis=-1, keepdims=True)
        att_ref[...] = (e / denom).astype(att_ref.dtype)

    # ---- phase 1: out = gamma * (attention @ x) + x, tile by tile ----------
    @pl.when(phase == 1)
    def _():
        if xcache_ref is not None:
            start = pl.multiple_of(nt * tn, 128)
            x = xcache_ref[:, pl.ds(start, tn)]    # f32, no HBM re-read
        else:
            x = x_ref[0]
        out = jnp.dot(att_ref[...], x.astype(mxu_dtype),
                      preferred_element_type=jnp.float32)
        o_ref[0] = (gamma_ref[0] * out + x).astype(o_ref.dtype)


def cam_module_forward(x, gamma, *, tn_max=1024, mxu_dtype=jnp.bfloat16,
                       force_no_cache=False):
    """x: (B, C, H, W) float32, gamma: (1,) float32. Returns (B, C, H, W)."""
    B, C, H, W = x.shape
    N = H * W
    itemsize = jnp.dtype(x.dtype).itemsize
    att_itemsize = jnp.dtype(mxu_dtype).itemsize

    # C padded to a lane multiple: lane-dense (C_pad, C_pad) accumulator and
    # 128-aligned MXU operands (free in the DANet regime where C >= 128).
    c_pad = _round_up(C, 128)

    budget = _vmem_budget_bytes()
    acc_bytes = c_pad * c_pad * (4 + att_itemsize)   # f32 energy + attention

    # Pick tn first (largest lane-dense tile that fits the streaming budget),
    # then pad N up to a multiple of tn — never shrink tn to fit an awkward N.
    tn = min(_round_up(tn_max, 128), _round_up(N, 128))
    while tn > 128 and 4 * c_pad * tn * itemsize + acc_bytes > budget:
        tn -= 128
    n_pad = _round_up(N, tn)
    num_nt = n_pad // tn

    # Per-batch f32 x-cache: phase 1 reads VMEM instead of re-reading HBM.
    cache_bytes = c_pad * n_pad * itemsize
    use_cache = (not force_no_cache) and (
        4 * c_pad * tn * itemsize + acc_bytes + cache_bytes <= budget)

    x_flat = x.reshape(B, C, N)
    if c_pad != C or n_pad != N:
        x_flat = jnp.pad(x_flat, ((0, 0), (0, c_pad - C), (0, n_pad - N)))

    if use_cache:
        # Phase 0 walks the N tiles; phase 1 stays pinned on the last tile so
        # no new input DMAs are issued (x is served from the VMEM cache).
        x_map = lambda b, p, nt: (b, 0, nt * (1 - p) + (num_nt - 1) * p)
    else:
        x_map = lambda b, p, nt: (b, 0, nt)

    scratch = [pltpu.VMEM((c_pad, c_pad), jnp.float32),   # energy accumulator
               pltpu.VMEM((c_pad, c_pad), mxu_dtype)]     # attention (MXU LHS)
    if use_cache:
        scratch.append(pltpu.VMEM((c_pad, n_pad), x.dtype))

    kernel = functools.partial(_cam_kernel, valid_c=C, tn=tn, mxu_dtype=mxu_dtype)

    out_flat = pl.pallas_call(
        kernel,
        out_shape=jax.ShapeDtypeStruct((B, c_pad, n_pad), x.dtype),
        grid_spec=pltpu.PrefetchScalarGridSpec(
            num_scalar_prefetch=0,
            grid=(B, 2, num_nt),
            in_specs=[
                pl.BlockSpec(memory_space=pltpu.MemorySpace.SMEM),   # gamma
                pl.BlockSpec((1, c_pad, tn), x_map),
            ],
            # Phase-aware: the output block only advances (and is only written
            # back to HBM) during phase 1.
            out_specs=pl.BlockSpec((1, c_pad, tn),
                                   lambda b, p, nt: (b, 0, nt * p)),
            scratch_shapes=scratch,
        ),
        compiler_params=pltpu.CompilerParams(
            dimension_semantics=("parallel", "arbitrary", "arbitrary"),
            vmem_limit_bytes=int(budget),
        ),
    )(gamma, x_flat)

    return out_flat[:, :C, :N].reshape(B, C, H, W)


# ----------------------------- references -----------------------------------
def _cam_reference(x, gamma):
    """Exact f32 reference mirroring the PyTorch forward."""
    B, C, H, W = x.shape
    q = x.reshape(B, C, -1).astype(jnp.float32)
    energy = jnp.einsum("bcn,bdn->bcd", q, q, precision=lax.Precision.HIGHEST)
    energy_new = jnp.max(energy, axis=-1, keepdims=True) - energy
    attention = jax.nn.softmax(energy_new, axis=-1)
    out = jnp.einsum("bcd,bdn->bcn", attention, q,
                     precision=lax.Precision.HIGHEST)
    return (gamma[0] * out).reshape(B, C, H, W) + x


def _cam_reference_mixed(x, gamma, mxu_dtype=jnp.bfloat16):
    """Same math with the kernel's documented bf16 MXU feed (f32 accumulate,
    exact f32 residual)."""
    B, C, H, W = x.shape
    q = x.reshape(B, C, -1).astype(jnp.float32)
    qm = q.astype(mxu_dtype).astype(jnp.float32)
    energy = jnp.einsum("bcn,bdn->bcd", qm, qm, precision=lax.Precision.HIGHEST)
    energy_new = jnp.max(energy, axis=-1, keepdims=True) - energy
    attention = jax.nn.softmax(energy_new, axis=-1)
    am = attention.astype(mxu_dtype).astype(jnp.float32)
    out = jnp.einsum("bcd,bdn->bcn", am, qm, precision=lax.Precision.HIGHEST)
    return (gamma[0] * out).reshape(B, C, H, W) + x


if __name__ == "__main__":
    k0, k1 = jax.random.split(jax.random.PRNGKey(0))

    # Shapes consistent with the module (B, C, H, W); magnitudes representative
    # of normalised conv feature maps so the channel softmax is well scaled.
    B, C, H, W = 2, 4, 16, 16
    x = 0.2 * jax.random.normal(k0, (B, C, H, W), dtype=jnp.float32)

    # Parameter from CAM_Module.__init__: gamma = zeros(1).
    gamma0 = jnp.zeros((1,), dtype=jnp.float32)
    out0 = cam_module_forward(x, gamma0)
    jax.block_until_ready(out0)
    # gamma == 0 -> output must reproduce x exactly (exact f32 residual path).
    assert jnp.allclose(out0, _cam_reference(x, gamma0), atol=1e-6)

    # Non-zero gamma exercises the attention path.
    gamma = jnp.array([0.5], dtype=jnp.float32)
    out1 = cam_module_forward(x, gamma)
    jax.block_until_ready(out1)
    # Tight check vs a reference using the same bf16 MXU feed ...
    assert jnp.allclose(out1, _cam_reference_mixed(x, gamma), atol=2e-3, rtol=2e-3)
    # ... and the documented looser bound vs the exact f32 reference
    # (tolerance reflects the bf16 matmul-operand quantisation).
    assert jnp.allclose(out1, _cam_reference(x, gamma), atol=5e-2, rtol=5e-2)

    # Multi-tile path (num_nt > 1) with the VMEM x-cache ...
    x2 = 0.2 * jax.random.normal(k1, (1, 8, 16, 32), dtype=jnp.float32)
    out2 = cam_module_forward(x2, gamma, tn_max=128)
    jax.block_until_ready(out2)
    assert jnp.allclose(out2, _cam_reference_mixed(x2, gamma), atol=2e-3, rtol=2e-3)

    # ... and the streaming fallback (no VMEM x-cache).
    out3 = cam_module_forward(x2, gamma, tn_max=128, force_no_cache=True)
    jax.block_until_ready(out3)
    assert jnp.allclose(out3, _cam_reference_mixed(x2, gamma), atol=2e-3, rtol=2e-3)

    print("KERNEL_OK")
</pallas_src>

<mosaic_0001>
module attributes {stable_mosaic.version = 11 : i64} {
  func.func @_cam_kernel(%arg0: i32, %arg1: i32, %arg2: i32, %arg3: memref<1xf32, #tpu.memory_space<smem>>, %arg4: memref<1x128x256xf32, #tpu.memory_space<vmem>>, %arg5: memref<1x128x256xf32, #tpu.memory_space<vmem>>, %arg6: memref<128x128xf32, #tpu.memory_space<vmem>>, %arg7: memref<128x128xbf16, #tpu.memory_space<vmem>>, %arg8: memref<128x256xf32, #tpu.memory_space<vmem>>) attributes {dimension_semantics = [#tpu.dimension_semantics<parallel>, #tpu.dimension_semantics<arbitrary>, #tpu.dimension_semantics<arbitrary>], iteration_bounds = array<i64: 2, 2, 1>, scalar_prefetch = 0 : i64, scratch_operands = 3 : i64, tpu.core_type = #tpu.core_type<tc>, window_params = [{transform_indices = @transform_0, window_bounds = array<i64: 1>}, {transform_indices = @transform_1, window_bounds = array<i64: 1, 128, 256>}, {transform_indices = @transform_2, window_bounds = array<i64: 1, 128, 256>}]} {
    %c0_i32 = arith.constant 0 : i32
    %0 = arith.cmpi eq, %arg1, %c0_i32 : i32
    %c0_i32_0 = arith.constant 0 : i32
    %1 = arith.cmpi eq, %arg2, %c0_i32_0 : i32
    %2 = arith.andi %0, %1 : i1
    %3 = arith.extui %2 : i1 to i32
    %c0_i32_1 = arith.constant 0 : i32
    %4 = arith.cmpi ne, %3, %c0_i32_1 : i32
    scf.if %4 {
      %cst = arith.constant 0.000000e+00 : f32
      %16 = vector.broadcast %cst : f32 to vector<128x128xf32>
      %c0 = arith.constant 0 : index
      %c0_8 = arith.constant 0 : index
      %17 = vector.load %arg6[%c0, %c0_8] : memref<128x128xf32, #tpu.memory_space<vmem>>, vector<128x128xf32>
      tpu.vector_store %arg6[%c0, %c0_8], %16 {strides = array<i32>} : memref<128x128xf32, #tpu.memory_space<vmem>>, vector<128x128xf32>,
    } else {
    }
    %c0_i32_2 = arith.constant 0 : i32
    %5 = arith.cmpi eq, %arg1, %c0_i32_2 : i32
    %6 = arith.extui %5 : i1 to i32
    %c0_i32_3 = arith.constant 0 : i32
    %7 = arith.cmpi ne, %6, %c0_i32_3 : i32
    scf.if %7 {
      %c0 = arith.constant 0 : index
      %c0_8 = arith.constant 0 : index
      %c0_9 = arith.constant 0 : index
      %16 = vector.load %arg4[%c0, %c0_8, %c0_9] : memref<1x128x256xf32, #tpu.memory_space<vmem>>, vector<1x128x256xf32>
      %17 = vector.shape_cast %16 : vector<1x128x256xf32> to vector<128x256xf32>
      %18 = arith.truncf %17 : vector<128x256xf32> to vector<128x256xbf16>
      %c0_10 = arith.constant 0 : index
      %c0_11 = arith.constant 0 : index
      %19 = vector.load %arg6[%c0_10, %c0_11] : memref<128x128xf32, #tpu.memory_space<vmem>>, vector<128x128xf32>
      %cst = arith.constant dense<0.000000e+00> : vector<128x128xf32>
      %20 = tpu.matmul %18, %18, %cst {dimension_numbers = #tpu.dot_dimension_numbers<[1], [1], [0], [0], [0, 0, 1, 0], [], []>} : vector<128x256xbf16>, vector<128x256xbf16>, vector<128x128xf32> -> vector<128x128xf32>
      %21 = arith.addf %19, %20 : vector<128x128xf32>
      %c0_12 = arith.constant 0 : index
      %c0_13 = arith.constant 0 : index
      %22 = vector.load %arg6[%c0_12, %c0_13] : memref<128x128xf32, #tpu.memory_space<vmem>>, vector<128x128xf32>
      tpu.vector_store %arg6[%c0_12, %c0_13], %21 {strides = array<i32>} : memref<128x128xf32, #tpu.memory_space<vmem>>, vector<128x128xf32>,
      %c256_i32 = arith.constant 256 : i32
      %23 = arith.muli %arg2, %c256_i32 : i32
      %24 = tpu.assume_multiple %23, 128 : i32
      %c0_14 = arith.constant 0 : index
      %25 = arith.index_cast %24 : i32 to index
      %26 = vector.load %arg8[%c0_14, %25] : memref<128x256xf32, #tpu.memory_space<vmem>>, vector<128x256xf32>
      tpu.vector_store %arg8[%c0_14, %25], %17 {strides = array<i32>} : memref<128x256xf32, #tpu.memory_space<vmem>>, vector<128x256xf32>,
    } else {
    }
    %c0_i32_4 = arith.constant 0 : i32
    %8 = arith.cmpi eq, %arg1, %c0_i32_4 : i32
    %c0_i32_5 = arith.constant 0 : i32
    %9 = arith.cmpi eq, %arg2, %c0_i32_5 : i32
    %10 = arith.andi %8, %9 : i1
    %11 = arith.extui %10 : i1 to i32
    %c0_i32_6 = arith.constant 0 : i32
    %12 = arith.cmpi ne, %11, %c0_i32_6 : i32
    scf.if %12 {
      %c0 = arith.constant 0 : index
      %c0_8 = arith.constant 0 : index
      %16 = vector.load %arg6[%c0, %c0_8] : memref<128x128xf32, #tpu.memory_space<vmem>>, vector<128x128xf32>
      %17 = tpu.iota {dimensions = array<i32: 1>} : vector<128x128xi32>
      %c4_i32 = arith.constant 4 : i32
      %18 = vector.broadcast %c4_i32 : i32 to vector<128x128xi32>
      %19 = arith.cmpi slt, %17, %18 : vector<128x128xi32>
      %cst = arith.constant 0x7F800000 : f32
      %20 = vector.broadcast %cst : f32 to vector<128x128xf32>
      %21 = arith.select %19, %16, %20 : vector<128x128xi1>, vector<128x128xf32>
      %cst_9 = arith.constant dense<0x7F800000> : vector<128xf32>
      %22 = vector.multi_reduction <minimumf>, %21, %cst_9 [1] : vector<128x128xf32> to vector<128xf32>
      %23 = vector.shape_cast %22 : vector<128xf32> to vector<128x1xf32>
      %24 = vector.broadcast %23 : vector<128x1xf32> to vector<128x128xf32>
      %25 = arith.subf %24, %21 : vector<128x128xf32>
      %26 = math.exp %25 : vector<128x128xf32>
      %cst_10 = arith.constant dense<0.000000e+00> : vector<128xf32>
      %27 = vector.multi_reduction <add>, %26, %cst_10 [1] : vector<128x128xf32> to vector<128xf32>
      %28 = vector.shape_cast %27 : vector<128xf32> to vector<128x1xf32>
      %29 = vector.broadcast %28 : vector<128x1xf32> to vector<128x128xf32>
      %30 = arith.divf %26, %29 : vector<128x128xf32>
      %31 = arith.truncf %30 : vector<128x128xf32> to vector<128x128xbf16>
      %c0_11 = arith.constant 0 : index
      %c0_12 = arith.constant 0 : index
      %32 = vector.load %arg7[%c0_11, %c0_12] : memref<128x128xbf16, #tpu.memory_space<vmem>>, vector<128x128xbf16>
      tpu.vector_store %arg7[%c0_11, %c0_12], %31 {strides = array<i32>} : memref<128x128xbf16, #tpu.memory_space<vmem>>, vector<128x128xbf16>,
    } else {
    }
    %c1_i32 = arith.constant 1 : i32
    %13 = arith.cmpi eq, %arg1, %c1_i32 : i32
    %14 = arith.extui %13 : i1 to i32
    %c0_i32_7 = arith.constant 0 : i32
    %15 = arith.cmpi ne, %14, %c0_i32_7 : i32
    scf.if %15 {
      %c256_i32 = arith.constant 256 : i32
      %16 = arith.muli %arg2, %c256_i32 : i32
      %17 = tpu.assume_multiple %16, 128 : i32
      %c0 = arith.constant 0 : index
      %18 = arith.index_cast %17 : i32 to index
      %19 = vector.load %arg8[%c0, %18] : memref<128x256xf32, #tpu.memory_space<vmem>>, vector<128x256xf32>
      %c0_8 = arith.constant 0 : index
      %c0_9 = arith.constant 0 : index
      %20 = vector.load %arg7[%c0_8, %c0_9] : memref<128x128xbf16, #tpu.memory_space<vmem>>, vector<128x128xbf16>
      %21 = arith.truncf %19 : vector<128x256xf32> to vector<128x256xbf16>
      %cst = arith.constant dense<0.000000e+00> : vector<128x256xf32>
      %22 = tpu.matmul %20, %21, %cst {dimension_numbers = #tpu.dot_dimension_numbers<[1], [0], [0], [1], [0, 0, 1, 1], [], []>} : vector<128x128xbf16>, vector<128x256xbf16>, vector<128x256xf32> -> vector<128x256xf32>
      %c0_10 = arith.constant 0 : index
      %23 = memref.load %arg3[%c0_10] : memref<1xf32, #tpu.memory_space<smem>>
      %24 = vector.broadcast %23 : f32 to vector<128x256xf32>
      %25 = arith.mulf %24, %22 : vector<128x256xf32>
      %26 = arith.addf %25, %19 : vector<128x256xf32>
      %c0_11 = arith.constant 0 : index
      %c0_12 = arith.constant 0 : index
      %c0_13 = arith.constant 0 : index
      %27 = vector.load %arg5[%c0_11, %c0_12, %c0_13] : memref<1x128x256xf32, #tpu.memory_space<vmem>>, vector<1x128x256xf32>
      %28 = vector.shape_cast %27 : vector<1x128x256xf32> to vector<128x256xf32>
      %29 = vector.shape_cast %26 : vector<128x256xf32> to vector<1x128x256xf32>
      tpu.vector_store %arg5[%c0_11, %c0_12, %c0_13], %29 {strides = array<i32>} : memref<1x128x256xf32, #tpu.memory_space<vmem>>, vector<1x128x256xf32>,
    } else {
    }
    return
  }
  func.func @transform_0(%arg0: i32, %arg1: i32, %arg2: i32) -> i32 {
    %c0_i32 = arith.constant 0 : i32
    %c0_i32_0 = arith.constant 0 : i32
    return %c0_i32 : i32
  }
  func.func @transform_1(%arg0: i32, %arg1: i32, %arg2: i32) -> (i32, i32, i32) {
    %c1_i32 = arith.constant 1 : i32
    %0 = arith.subi %c1_i32, %arg1 : i32
    %1 = arith.muli %arg2, %0 : i32
    %c0_i32 = arith.constant 0 : i32
    %2 = arith.muli %c0_i32, %arg1 : i32
    %3 = arith.addi %1, %2 : i32
    %c0_i32_0 = arith.constant 0 : i32
    %c0_i32_1 = arith.constant 0 : i32
    return %arg0, %c0_i32_0, %3 : i32, i32, i32
  }
  func.func @transform_2(%arg0: i32, %arg1: i32, %arg2: i32) -> (i32, i32, i32) {
    %0 = arith.muli %arg2, %arg1 : i32
    %c0_i32 = arith.constant 0 : i32
    %c0_i32_0 = arith.constant 0 : i32
    return %arg0, %c0_i32, %0 : i32, i32, i32
  }
}

</mosaic_0001>

<bundles_post_ra>
// kernel: tpu_custom_call.1
= control target key start
LH: loop header
LB: loop body
LE: loop exit
PB: predicated region body
PF: predicated region fallthrough
CT: control target
= control target key end

     0   :  { %s1954_s0 = inlined_call_operand.<no memory space> [shape: f32[1], index: 0, kind: input, shape index: {}]   ;;  %s1955_s1 = inlined_call_operand.hbm [shape: f32[2,128,256], index: 1, kind: input, shape index: {}]   ;;  %s1956_s2 = inlined_call_operand.hbm [shape: f32[2,128,256], index: 2, kind: output, shape index: {}]  }
   0x1   :  { %7 = sst [smem:[#allocation5]] %s1954_s0 }
   0x2   :  { %8 = vsyncpa [#allocation7], 0 }
   0x3   :  { %10 = vsyncpa [#allocation7 + $0x1], 0 }
   0x4   :  { %11 = vsyncpa [#allocation8], 0 }
   0x5   :  { %13 = vsyncpa [#allocation8 + $0x1], 0  ;;  %s1401_s11 = smov 0   ;;  %s1403_s12 = smov 0  }
   0x6   :  { %s1405_s13 = smov 0   ;;  %s1407_s14 = smov 0  }
   0x7   :  { %s1409_s15 = smov 0   ;;  %s1411_s16 = smov 0  }
   0x8   :  { %s1413_s17 = smov 0   ;;  %s1415_s18 = smov 0  }
   0x9 LB: > { %s1044_s0 = sadd.s32 4294967295, %s1373_s18   ;;  %s1045_s19 = sadd.s32 4294967294, %s1373_s18   ;;  %s1373_s18 = sphi %s1415_s18, %s19_s18   ;;  %s1369_s17 = sphi %s1413_s17, %s1972_s17   ;;  %s1365_s16 = sphi %s1411_s16, %s1971_s16   ;;  %s1361_s15 = sphi %s1409_s15, %s1970_s15   ;;  %s1357_s14 = sphi %s1407_s14, %s1969_s14   ;;  %s1353_s13 = sphi %s1405_s13, %s1968_s13   ;;  %s1349_s12 = sphi %s1403_s12, %s1967_s12   ;;  %s1345_s11 = sphi %s1401_s11, %s1966_s11  }
   0xa   : > { %s34_s20 = sadd.s32 1, %s1365_s16  ;;  %s38_s21 = sadd.s32 1, %s1369_s17 }
   0xb   : > { %p36_p0 = scmp.ge.s32.totalorder %s34_s20, 2  ;;  %s72_s22 = sadd.s32 1, %s1353_s13 }
   0xc   : > { %p79_p1 = scmp.ne.s32.totalorder %s1353_s13, %s1349_s12  ;;  %p80_p2 = scmp.eq.s32.totalorder %s1373_s18, 0 }
   0xd   : > { %s1974_s20 = smov (%p36_p0, %s34_s20), 0  ;;  %s1976_s21 = smov (!%p36_p0, %s38_s21), %s1369_s17 }
   0xe   : > { %p1452_p3 = por %p80_p2, %p79_p1  ;;  %p85_p4 = scmp.ne.s32.totalorder %s1349_s12, %s1345_s11 }
   0xf   : > { %p40_p5 = scmp.ge.s32.totalorder %s1976_s21, 2  ;;  %p86_p6 = scmp.eq.s32.totalorder %s1044_s0, 0 }
  0x10   : > { %p113_p7 = scmp.eq.s32.totalorder %s1044_s0, 3  ;;  %p119_p8 = scmp.eq.s32.totalorder %s1045_s19, 3 }
  0x11   : > { %s1978_s21 = smov (%p40_p5, %s1976_s21), 0  ;;  %p1460_p9 = por %p86_p6, %p85_p4 }
  0x12   : > { %p1464_p10 = por %p113_p7, %p79_p1  ;;  %s67_s26 = ssub.s32 %s1369_s17, %s1978_s21 }
  0x13   : > { %p1470_p11 = por %p119_p8, %p85_p4  ;;  %p70_p12 = scmp.eq.s32.totalorder %s67_s26, 0 }
  0x14   : > { %s1960_s25 = scalar_select %p1464_p10, 1, 0 }
  0x15   : > { %s1961_s27 = scalar_select %p1470_p11, 1, 0 }
  0x16   : > { %p1109_p13 = scmp.lt.s32.totalorder %s1373_s18, 4  ;;  %s142_s28 = sand.u32 1, %s1353_s13  }
  0x17   : > { %s1477_s29 = scalar_select %p70_p12, %s1353_s13, %s72_s22  }
  0x18   : > { %s1048_s30 = sshll.u32 %s142_s28, 8  ;;  %s1062_s3 = sshll.u32 %s1369_s17, 12 }
  0x19   : > { %s1483_s6 = scalar_lea.hbm %s1955_s1, %s1062_s3  ;;  %s146_s7 = scalar_lea.vmem [#allocation6], %s1048_s30 }
  0x1a   : > { %s157_s8 = sshll.u32 %s146_s7, 4  ;;  %p1489_p0 = pnand %p1109_p13, %p1452_p3  ;;  %s1485_s8 = int_to_ptr.vmem [resolvable:$true] %s157_s8 }
  0x1b   : > { %s1494_s10 = scalar_lea.sflag [#allocation7], %s142_s28  ;;  %s1245_s0 = scalar_lea.hbm %s1483_s6, 4096 }
  0x1c   : > { %p1246_p2 = scmp.ne.s32.totalorder %s1483_s6, %s1245_s0  ;;  %p1247_p4 = pneg %p1489_p0 }
  0x1d   : > { %s1250_s23 = scalar_lea.hbm %s1955_s1, 8192  ;;  %p1251_p3 = scmp.lt.u32.totalorder %s1483_s6, %s1955_s1 }
  0x1e   : > { %p1248_p5 = pnand %p1247_p4, %p1246_p2  ;;  %p1252_p7 = scmp.lt.u32.totalorder %s1250_s23, %s1245_s0 }
  0x1f   : > { %p1254_p12 = scmp.lt.u32.totalorder %s1245_s0, %s1483_s6 }
  0x20   : > { %p1249_p6 = pneg %p1248_p5  ;;  %p1253_p8 = por %p1252_p7, %p1251_p3 }
  0x22   : > { %p1255_p13 = por %p1254_p12, %p1253_p8 }
  0x24   : > { %p1256_p1 = pnand %p1255_p13, %p1249_p6 }
  0x26   : > { %1259 = shalt.err (!%p1256_p1)
}
  0x27   : > { %s1260_s28 = scalar_lea.vmem %s1485_s8, 4096  ;;  %s1375_s3 = smov [#allocation6]  }
  0x28   : > { %p1261_p2 = scmp.ne.s32.totalorder %s1485_s8, %s1260_s28  ;;  %s1265_s4 = sshll.u32 %s1375_s3, 4  ;;  %s1266_s4 = int_to_ptr.vmem [resolvable:$false] %s1265_s4 }
  0x29   : > { %s1267_s5 = scalar_lea.vmem %s1266_s4, 8192  ;;  %p1268_p10 = scmp.lt.s32.totalorder %s1485_s8, %s1266_s4 }
  0x2a   : > { %p1263_p5 = pnand %p1261_p2, %p1247_p4  ;;  %p1269_p3 = scmp.lt.s32.totalorder %s1267_s5, %s1260_s28 }
  0x2c   : > { %p1264_p11 = pneg %p1263_p5  ;;  %p1270_p7 = por %p1269_p3, %p1268_p10 }
  0x2e   : > { %p1271_p8 = pnand %p1270_p7, %p1264_p11 }
  0x30   : > { %1274 = shalt.err (!%p1271_p8)
}
  0x31   : > { %s1376_s7 = smov 256   ;;  %s1377_s0 = smov 16  }
  0x32   : > { %1104 = dma.hbm_to_vmem [thread:$0]  (!%p1489_p0), %s1483_s6, 4096, %s1485_s8, %s1494_s10, %s1376_s7, %s1376_s7, %s1377_s0  }
  0x33   : > { %p165_p1 = scmp.lt.s32.totalorder %s1373_s18, 5  ;;  %p1963_p4 = scmp.ge.s32.totalorder %s1373_s18, 1 }
  0x35   : > { %p166_p6 = pnand %p1963_p4, %p165_p1 }
  0x36   : > { %s1526_s19 = sand.u32 (!%p166_p6), 1, %s1349_s12  }
  0x37   : > { %169 = sbr.rel (%p166_p6) target bundleno = 1041 (0x411), region = 28  ;;  %s1052_s22 = sshll.u32 (!%p166_p6), %s1526_s19, 8 }
  0x38   : > { %s172_s23 = scalar_lea.sflag (!%p166_p6), [#allocation7], %s1526_s19  ;;  %s1530_s26 = scalar_lea.vmem (!%p166_p6), [#allocation6], %s1052_s22 }
  0x3e   : > { %1336 = dma.done.wait (%p1460_p9), %s172_s23, 4096  }
  0x3f   : > { %1338 = vsyncadd (%p1460_p9), %s172_s23, 4294963200  ;;  %p202_p10 = scmp.eq.s32.totalorder %s1357_s14, 0  ;;  %s1537_s6 = scalar_lea.vmem [#allocation9], %s1052_s22 }
  0x40   : > { %v1378_v0 = vmov (%p202_p10), 0.0  }
  0x41   : > { %207 = sbr.rel (!%p202_p10) target bundleno = 73 (0x49), region = 36  ;;  %208 = vst [vmem:[#allocation2] sm:$0xff] (%p202_p10), %v1378_v0  ;;  %209 = vst [vmem:[#allocation2 + $0x8] sm:$0xff] (%p202_p10), %v1378_v0 }
  0x42   : > { %210 = vst [vmem:[#allocation2 + $0x10] sm:$0xff] (%p202_p10), %v1378_v0  ;;  %211 = vst [vmem:[#allocation2 + $0x18] sm:$0xff] (%p202_p10), %v1378_v0 }
  0x43   : > { %212 = vst [vmem:[#allocation2 + $0x20] sm:$0xff] (%p202_p10), %v1378_v0  ;;  %213 = vst [vmem:[#allocation2 + $0x28] sm:$0xff] (%p202_p10), %v1378_v0 }
  0x44   : > { %214 = vst [vmem:[#allocation2 + $0x30] sm:$0xff] (%p202_p10), %v1378_v0  ;;  %215 = vst [vmem:[#allocation2 + $0x38] sm:$0xff] (%p202_p10), %v1378_v0 }
  0x45   : > { %216 = vst [vmem:[#allocation2 + $0x40] sm:$0xff] (%p202_p10), %v1378_v0  ;;  %217 = vst [vmem:[#allocation2 + $0x48] sm:$0xff] (%p202_p10), %v1378_v0 }
  0x46   : > { %218 = vst [vmem:[#allocation2 + $0x50] sm:$0xff] (%p202_p10), %v1378_v0  ;;  %219 = vst [vmem:[#allocation2 + $0x58] sm:$0xff] (%p202_p10), %v1378_v0 }
  0x47   : > { %220 = vst [vmem:[#allocation2 + $0x60] sm:$0xff] (%p202_p10), %v1378_v0  ;;  %221 = vst [vmem:[#allocation2 + $0x68] sm:$0xff] (%p202_p10), %v1378_v0 }
  0x48   : > { %222 = vst [vmem:[#allocation2 + $0x70] sm:$0xff] %v1378_v0  ;;  %223 = vst [vmem:[#allocation2 + $0x78] sm:$0xff] %v1378_v0 }
  0x49 PF: > { %p1055_p9 = scmp.ne.s32.totalorder %s1357_s14, 0 }
  0x4a   : > { %v228_v1 = vld [vmem:[%s1530_s26 + $0x8] sm:$0xff] (!%p1055_p9)  ;;  %v230_v2 = vld [vmem:[%s1530_s26 + $0x18] sm:$0xff] (!%p1055_p9)  ;;  %v227_v3 = vld [vmem:[%s1530_s26] sm:$0xff] (!%p1055_p9) }
  0x4b   : > { %226 = sbr.rel (%p1055_p9) target bundleno = 382 (0x17e), region = 40  ;;  %v260_v4 = vpack.c.bf16 (!%p1055_p9), %v230_v2, %v228_v1  ;;  %426 = vst [vmem:[#allocation4 + $0x8] sm:$0xff] (!%p1055_p9), %v228_v1  ;;  %428 = vst [vmem:[#allocation4 + $0x18] sm:$0xff] (!%p1055_p9), %v230_v2  ;;  %v229_v5 = vld [vmem:[%s1530_s26 + $0x10] sm:$0xff] (!%p1055_p9)  ;;  %v232_v6 = vld [vmem:[%s1530_s26 + $0x28] sm:$0xff] (!%p1055_p9) }
  0x4c   : > { %425 = vst [vmem:[#allocation4] sm:$0xff] (!%p1055_p9), %v227_v3  ;;  %v234_v7 = vld [vmem:[%s1530_s26 + $0x38] sm:$0xff] (!%p1055_p9)  ;;  %v1548_v8 = vpack.c.bf16 (!%p1055_p9), %v229_v5, %v227_v3  ;;  %427 = vst [vmem:[#allocation4 + $0x10] sm:$0xff] (!%p1055_p9), %v229_v5  ;;  %v231_v10 = vld [vmem:[%s1530_s26 + $0x20] sm:$0xff] (!%p1055_p9) }
  0x4d   : > { %v1550_v9 = vpack.c.bf16 (!%p1055_p9), %v234_v7, %v232_v6  ;;  %430 = vst [vmem:[#allocation4 + $0x28] sm:$0xff] (!%p1055_p9), %v232_v6  ;;  %432 = vst [vmem:[#allocation4 + $0x38] sm:$0xff] (!%p1055_p9), %v234_v7  ;;  %v233_v11 = vld [vmem:[%s1530_s26 + $0x30] sm:$0xff] (!%p1055_p9)  ;;  %v236_v12 = vld [vmem:[%s1530_s26 + $0x48] sm:$0xff] (!%p1055_p9)  ;;  %291 = vmatprep.subr.bf16.mxu0 (!%p1055_p9), %v260_v4  ;;  %1065 = vmatprep.subr.bf16.mxu1 (!%p1055_p9), %v260_v4 }
  0x4e   : > { %429 = vst [vmem:[#allocation4 + $0x20] sm:$0xff] (!%p1055_p9), %v231_v10  ;;  %431 = vst [vmem:[#allocation4 + $0x30] sm:$0xff] (!%p1055_p9), %v233_v11  ;;  %v238_v13 = vld [vmem:[%s1530_s26 + $0x58] sm:$0xff] (!%p1055_p9)  ;;  %v235_v14 = vld [vmem:[%s1530_s26 + $0x40] sm:$0xff] (!%p1055_p9)  ;;  %292 = vmatpush1.bf16.xpose.msra.mxu0 (!%p1055_p9), %v1548_v8  ;;  %1073 = vmatpush1.bf16.xpose.msra.mxu1 (!%p1055_p9), %v1548_v8  ;;  %v261_v29 = vpack.c.bf16 (!%p1055_p9), %v233_v11, %v231_v10 }
  0x4f   : > { %434 = vst [vmem:[#allocation4 + $0x48] sm:$0xff] (!%p1055_p9), %v236_v12  ;;  %v237_v15 = vld [vmem:[%s1530_s26 + $0x50] sm:$0xff] (!%p1055_p9)  ;;  %436 = vst [vmem:[#allocation4 + $0x58] sm:$0xff] (!%p1055_p9), %v238_v13  ;;  %v240_v16 = vld [vmem:[%s1530_s26 + $0x68] sm:$0xff] (!%p1055_p9)  ;;  %293 = vmatprep.subr.bf16.mxu0 (!%p1055_p9), %v1550_v9  ;;  %1066 = vmatprep.subr.bf16.mxu1 (!%p1055_p9), %v1550_v9  ;;  %v264_v33 = vpack.c.bf16 (!%p1055_p9), %v238_v13, %v236_v12 }
  0x50   : > { %433 = vst [vmem:[#allocation4 + $0x40] sm:$0xff] (!%p1055_p9), %v235_v14  ;;  %435 = vst [vmem:[#allocation4 + $0x50] sm:$0xff] (!%p1055_p9), %v237_v15  ;;  %v242_v17 = vld [vmem:[%s1530_s26 + $0x78] sm:$0xff] (!%p1055_p9)  ;;  %v239_v18 = vld [vmem:[%s1530_s26 + $0x60] sm:$0xff] (!%p1055_p9)  ;;  %323 = vmatprep.mubr.bf16.mxu0 (!%p1055_p9), %v260_v4  ;;  %v263_v39 = vpack.c.bf16 (!%p1055_p9), %v237_v15, %v235_v14 }
  0x51   : > { %438 = vst [vmem:[#allocation4 + $0x68] sm:$0xff] (!%p1055_p9), %v240_v16  ;;  %440 = vst [vmem:[#allocation4 + $0x78] sm:$0xff] (!%p1055_p9), %v242_v17  ;;  %v241_v19 = vld [vmem:[%s1530_s26 + $0x70] sm:$0xff] (!%p1055_p9)  ;;  %v244_v20 = vld [vmem:[%s1530_s26 + $0x88] sm:$0xff] (!%p1055_p9)  ;;  %v266_v40 = vpack.c.bf16 (!%p1055_p9), %v242_v17, %v240_v16 }
  0x52   : > { %437 = vst [vmem:[#allocation4 + $0x60] sm:$0xff] %v239_v18  ;;  %v246_v21 = vld [vmem:[%s1530_s26 + $0x98] sm:$0xff]  ;;  %439 = vst [vmem:[#allocation4 + $0x70] sm:$0xff] %v241_v19  ;;  %v243_v23 = vld [vmem:[%s1530_s26 + $0x80] sm:$0xff]  ;;  %v265_v41 = vpack.c.bf16 %v241_v19, %v239_v18 }
  0x53   : > { %v268_v22 = vpack.c.bf16 %v246_v21, %v244_v20  ;;  %442 = vst [vmem:[#allocation4 + $0x88] sm:$0xff] %v244_v20  ;;  %444 = vst [vmem:[#allocation4 + $0x98] sm:$0xff] %v246_v21  ;;  %v245_v24 = vld [vmem:[%s1530_s26 + $0x90] sm:$0xff]  ;;  %v248_v25 = vld [vmem:[%s1530_s26 + $0xa8] sm:$0xff] }
  0x54   : > { %441 = vst [vmem:[#allocation4 + $0x80] sm:$0xff] %v243_v23  ;;  %443 = vst [vmem:[#allocation4 + $0x90] sm:$0xff] %v245_v24  ;;  %v250_v26 = vld [vmem:[%s1530_s26 + $0xb8] sm:$0xff]  ;;  %v247_v27 = vld [vmem:[%s1530_s26 + $0xa0] sm:$0xff]  ;;  %v267_v42 = vpack.c.bf16 %v245_v24, %v243_v23 }
  0x55   : > { %446 = vst [vmem:[#allocation4 + $0xa8] sm:$0xff] %v248_v25  ;;  %v249_v28 = vld [vmem:[%s1530_s26 + $0xb0] sm:$0xff]  ;;  %448 = vst [vmem:[#allocation4 + $0xb8] sm:$0xff] %v250_v26  ;;  %v252_v30 = vld [vmem:[%s1530_s26 + $0xc8] sm:$0xff]  ;;  %355 = vmatprep.mubr.bf16.mxu1 %v268_v22  ;;  %v270_v43 = vpack.c.bf16 %v250_v26, %v248_v25 }
  0x56   : > { %445 = vst [vmem:[#allocation4 + $0xa0] sm:$0xff] %v247_v27  ;;  %447 = vst [vmem:[#allocation4 + $0xb0] sm:$0xff] %v249_v28  ;;  %v254_v31 = vld [vmem:[%s1530_s26 + $0xd8] sm:$0xff]  ;;  %v251_v32 = vld [vmem:[%s1530_s26 + $0xc0] sm:$0xff]  ;;  %294 = vmatpush1.bf16.xpose.msra.mxu0 %v261_v29  ;;  %1074 = vmatpush1.bf16.xpose.msra.mxu1 %v261_v29  ;;  %v269_v44 = vpack.c.bf16 %v249_v28, %v247_v27 }
  0x57   : > { %450 = vst [vmem:[#allocation4 + $0xc8] sm:$0xff] %v252_v30  ;;  %452 = vst [vmem:[#allocation4 + $0xd8] sm:$0xff] %v254_v31  ;;  %v253_v34 = vld [vmem:[%s1530_s26 + $0xd0] sm:$0xff]  ;;  %v256_v35 = vld [vmem:[%s1530_s26 + $0xe8] sm:$0xff]  ;;  %295 = vmatprep.subr.bf16.mxu0 %v264_v33  ;;  %1067 = vmatprep.subr.bf16.mxu1 %v264_v33  ;;  %v272_v45 = vpack.c.bf16 %v254_v31, %v252_v30 }
  0x58   : > { %449 = vst [vmem:[#allocation4 + $0xc0] sm:$0xff] %v251_v32  ;;  %v258_v36 = vld [vmem:[%s1530_s26 + $0xf8] sm:$0xff]  ;;  %451 = vst [vmem:[#allocation4 + $0xd0] sm:$0xff] %v253_v34  ;;  %v255_v37 = vld [vmem:[%s1530_s26 + $0xe0] sm:$0xff]  ;;  %v271_v46 = vpack.c.bf16 %v253_v34, %v251_v32 }
  0x59   : > { %454 = vst [vmem:[#allocation4 + $0xe8] sm:$0xff] %v256_v35  ;;  %456 = vst [vmem:[#allocation4 + $0xf8] sm:$0xff] %v258_v36  ;;  %v257_v38 = vld [vmem:[%s1530_s26 + $0xf0] sm:$0xff]  ;;  %v274_v47 = vpack.c.bf16 %v258_v36, %v256_v35  ;;  %v275_v49 = vld [vmem:[#allocation2] sm:$0xff] }
  0x5a   : > { %453 = vst [vmem:[#allocation4 + $0xe0] sm:$0xff] %v255_v37  ;;  %455 = vst [vmem:[#allocation4 + $0xf0] sm:$0xff] %v257_v38  ;;  %v273_v48 = vpack.c.bf16 %v257_v38, %v255_v37  ;;  %v283_v50 = vld [vmem:[#allocation2 + $0x40] sm:$0xff]  ;;  %v276_v53 = vld [vmem:[#allocation2 + $0x8] sm:$0xff] }
  0x5b   : > { %v284_v54 = vld [vmem:[#allocation2 + $0x48] sm:$0xff]  ;;  %v277_v1 = vld [vmem:[#allocation2 + $0x10] sm:$0xff]  ;;  %v278_v5 = vld [vmem:[#allocation2 + $0x18] sm:$0xff] }
  0x5c   : > { %v285_v2 = vld [vmem:[#allocation2 + $0x50] sm:$0xff]  ;;  %v286_v6 = vld [vmem:[#allocation2 + $0x58] sm:$0xff]  ;;  %v279_v17 = vld [vmem:[#allocation2 + $0x20] sm:$0xff] }
  0x5d   : > { %v287_v18 = vld [vmem:[#allocation2 + $0x60] sm:$0xff]  ;;  %v280_v21 = vld [vmem:[#allocation2 + $0x28] sm:$0xff]  ;;  %v289_v34 = vld [vmem:[#allocation2 + $0x70] sm:$0xff] }
  0x5e   : > { %296 = vmatpush1.bf16.xpose.msra.mxu0 %v263_v39  ;;  %1075 = vmatpush1.bf16.xpose.msra.mxu1 %v263_v39  ;;  %v282_v37 = vld [vmem:[#allocation2 + $0x38] sm:$0xff] }
  0x5f   : > { %297 = vmatprep.subr.bf16.mxu0 %v266_v40  ;;  %1068 = vmatprep.subr.bf16.mxu1 %v266_v40  ;;  %v290_v38 = vld [vmem:[#allocation2 + $0x78] sm:$0xff] }
  0x66   : > { %298 = vmatpush1.bf16.xpose.msra.mxu0 %v265_v41  ;;  %1076 = vmatpush1.bf16.xpose.msra.mxu1 %v265_v41 }
  0x67   : > { %299 = vmatprep.subr.bf16.mxu0 %v268_v22  ;;  %1069 = vmatprep.subr.bf16.mxu1 %v268_v22  ;;  %v288_v22 = vld [vmem:[#allocation2 + $0x68] sm:$0xff] }
  0x6e   : > { %300 = vmatpush1.bf16.xpose.msra.mxu0 %v267_v42  ;;  %1077 = vmatpush1.bf16.xpose.msra.mxu1 %v267_v42 }
  0x6f   : > { %301 = vmatprep.subr.bf16.mxu0 %v270_v43  ;;  %1070 = vmatprep.subr.bf16.mxu1 %v270_v43 }
  0x76   : > { %302 = vmatpush1.bf16.xpose.msra.mxu0 %v269_v44  ;;  %1078 = vmatpush1.bf16.xpose.msra.mxu1 %v269_v44 }
  0x77   : > { %303 = vmatprep.subr.bf16.mxu0 %v272_v45  ;;  %1071 = vmatprep.subr.bf16.mxu1 %v272_v45 }
  0x7e   : > { %304 = vmatpush1.bf16.xpose.msra.mxu0 %v271_v46  ;;  %1079 = vmatpush1.bf16.xpose.msra.mxu1 %v271_v46 }
  0x7f   : > { %305 = vmatprep.subr.bf16.mxu0 %v274_v47  ;;  %1072 = vmatprep.subr.bf16.mxu1 %v274_v47 }
  0x86   : > { %306 = vmatpush1.bf16.xpose.msra.mxu0 %v273_v48  ;;  %1080 = vmatpush1.bf16.xpose.msra.mxu1 %v273_v48 }
  0x8d   : > { %324 = vmatmul.mubr.bf16.vlgmr.msra.gmra.mrb[0].mxu0 %v1548_v8  ;;  %356 = vmatmul.mubr.bf16.vlgmr.msra.gmra.mrb[0].mxu1 %v267_v42 }
  0x8e   : > { %331 = vmatprep.mubr.bf16.mxu0 %v1550_v9  ;;  %363 = vmatprep.mubr.bf16.mxu1 %v270_v43 }
  0x95   : > { %332 = vmatmul.mubr.bf16.gmra.mrb[4].mxu0 %v261_v29  ;;  %364 = vmatmul.mubr.bf16.gmra.mrb[4].mxu1 %v269_v44 }
  0x96   : > { %339 = vmatprep.mubr.bf16.mxu0 %v264_v33  ;;  %371 = vmatprep.mubr.bf16.mxu1 %v272_v45  ;;  %v281_v33 = vld [vmem:[#allocation2 + $0x30] sm:$0xff] }
  0x9d   : > { %340 = vmatmul.mubr.bf16.gmra.mrb[8].mxu0 %v263_v39  ;;  %372 = vmatmul.mubr.bf16.gmra.mrb[8].mxu1 %v271_v46 }
  0x9e   : > { %347 = vmatprep.mubr.bf16.mxu0 %v266_v40  ;;  %379 = vmatprep.mubr.bf16.mxu1 %v274_v47 }
  0xa5   : > { %348 = vmatmul.mubr.bf16.gmra.mrb[12].mxu0 %v265_v41  ;;  %380 = vmatmul.mubr.bf16.gmra.mrb[12].mxu1 %v273_v48 }
 0x160   : > { %v325_v51 = vpop.f32.mrb[0].mxu0  ;;  %v357_v52 = vpop.f32.mrb[0].mxu1 }
 0x161   : > { %v388_v55 = vadd.f32 %v325_v51, %v275_v49  ;;  %v396_v56 = vadd.f32 %v357_v52, %v283_v50  ;;  %v327_v57 = vpop.f32.mrb[1].mxu0  ;;  %v359_v58 = vpop.f32.mrb[1].mxu1 }
 0x162   : > { %v328_v59 = vpop.f32.mrb[2].mxu0  ;;  %v360_v60 = vpop.f32.mrb[2].mxu1 }
 0x163   : > { %404 = vst [vmem:[#allocation2] sm:$0xff] %v388_v55  ;;  %412 = vst [vmem:[#allocation2 + $0x40] sm:$0xff] %v396_v56  ;;  %v389_v61 = vadd.f32 %v328_v59, %v276_v53  ;;  %v397_v62 = vadd.f32 %v360_v60, %v284_v54  ;;  %v330_v63 = vpop.f32.mrb[3].mxu0  ;;  %v362_v0 = vpop.f32.mrb[3].mxu1 }
 0x165   : > { %405 = vst [vmem:[#allocation2 + $0x8] sm:$0xff] %v389_v61  ;;  %413 = vst [vmem:[#allocation2 + $0x48] sm:$0xff] %v397_v62 }
 0x168   : > { %v333_v3 = vpop.f32.mrb[4].mxu0  ;;  %v365_v4 = vpop.f32.mrb[4].mxu1 }
 0x169   : > { %v390_v7 = vadd.f32 %v333_v3, %v277_v1  ;;  %v398_v8 = vadd.f32 %v365_v4, %v285_v2  ;;  %v335_v9 = vpop.f32.mrb[5].mxu0  ;;  %v367_v10 = vpop.f32.mrb[5].mxu1 }
 0x16a   : > { %v336_v11 = vpop.f32.mrb[6].mxu0  ;;  %v368_v12 = vpop.f32.mrb[6].mxu1 }
 0x16b   : > { %406 = vst [vmem:[#allocation2 + $0x10] sm:$0xff] %v390_v7  ;;  %414 = vst [vmem:[#allocation2 + $0x50] sm:$0xff] %v398_v8  ;;  %v391_v13 = vadd.f32 %v336_v11, %v278_v5  ;;  %v399_v14 = vadd.f32 %v368_v12, %v286_v6  ;;  %v338_v15 = vpop.f32.mrb[7].mxu0  ;;  %v370_v16 = vpop.f32.mrb[7].mxu1 }
 0x16d   : > { %407 = vst [vmem:[#allocation2 + $0x18] sm:$0xff] %v391_v13  ;;  %415 = vst [vmem:[#allocation2 + $0x58] sm:$0xff] %v399_v14 }
 0x170   : > { %v341_v19 = vpop.f32.mrb[8].mxu0  ;;  %v373_v20 = vpop.f32.mrb[8].mxu1 }
 0x171   : > { %v392_v23 = vadd.f32 %v341_v19, %v279_v17  ;;  %v400_v24 = vadd.f32 %v373_v20, %v287_v18  ;;  %v343_v25 = vpop.f32.mrb[9].mxu0  ;;  %v375_v26 = vpop.f32.mrb[9].mxu1 }
 0x172   : > { %v344_v27 = vpop.f32.mrb[10].mxu0  ;;  %v376_v28 = vpop.f32.mrb[10].mxu1 }
 0x173   : > { %408 = vst [vmem:[#allocation2 + $0x20] sm:$0xff] %v392_v23  ;;  %416 = vst [vmem:[#allocation2 + $0x60] sm:$0xff] %v400_v24  ;;  %v393_v29 = vadd.f32 %v344_v27, %v280_v21  ;;  %v401_v30 = vadd.f32 %v376_v28, %v288_v22  ;;  %v346_v31 = vpop.f32.mrb[11].mxu0  ;;  %v378_v32 = vpop.f32.mrb[11].mxu1 }
 0x175   : > { %409 = vst [vmem:[#allocation2 + $0x28] sm:$0xff] %v393_v29  ;;  %417 = vst [vmem:[#allocation2 + $0x68] sm:$0xff] %v401_v30 }
 0x178   : > { %v349_v35 = vpop.f32.mrb[12].mxu0  ;;  %v381_v36 = vpop.f32.mrb[12].mxu1 }
 0x179   : > { %v394_v39 = vadd.f32 %v349_v35, %v281_v33  ;;  %v402_v40 = vadd.f32 %v381_v36, %v289_v34  ;;  %v351_v41 = vpop.f32.mrb[13].mxu0  ;;  %v383_v42 = vpop.f32.mrb[13].mxu1 }
 0x17a   : > { %v352_v43 = vpop.f32.mrb[14].mxu0  ;;  %v384_v44 = vpop.f32.mrb[14].mxu1 }
 0x17b   : > { %410 = vst [vmem:[#allocation2 + $0x30] sm:$0xff] %v394_v39  ;;  %418 = vst [vmem:[#allocation2 + $0x70] sm:$0xff] %v402_v40  ;;  %v395_v45 = vadd.f32 %v352_v43, %v282_v37  ;;  %v403_v46 = vadd.f32 %v384_v44, %v290_v38  ;;  %v354_v47 = vpop.f32.mrb[15].mxu0  ;;  %v386_v48 = vpop.f32.mrb[15].mxu1 }
 0x17d   : > { %411 = vst [vmem:[#allocation2 + $0x38] sm:$0xff] %v395_v45  ;;  %419 = vst [vmem:[#allocation2 + $0x78] sm:$0xff] %v403_v46 }
 0x17e PF: > { %458 = sbr.rel (!%p202_p10) target bundleno = 735 (0x2df), region = 44  ;;  %v475_v49 = vlaneseq (%p202_p10)  ;;  %v459_v50 = vld [vmem:[#allocation2] sm:$0xff] (%p202_p10)  ;;  %v461_v52 = vld [vmem:[#allocation2 + $0x10] sm:$0xff] (%p202_p10)  ;;  %v460_v53 = vld [vmem:[#allocation2 + $0x8] sm:$0xff] (%p202_p10) }
 0x17f   : > { %v462_v54 = vld [vmem:[#allocation2 + $0x18] sm:$0xff] (%p202_p10)  ;;  %v463_v59 = vld [vmem:[#allocation2 + $0x20] sm:$0xff] (%p202_p10)  ;;  %v464_v60 = vld [vmem:[#allocation2 + $0x28] sm:$0xff] (%p202_p10) }
 0x180   : > { %v476_v51 = vand.u32 (%p202_p10), 127, %v475_v49  ;;  %v467_v3 = vld [vmem:[#allocation2 + $0x40] sm:$0xff] (%p202_p10)  ;;  %v468_v4 = vld [vmem:[#allocation2 + $0x48] sm:$0xff] (%p202_p10)  ;;  %v469_v7 = vld [vmem:[#allocation2 + $0x50] sm:$0xff] (%p202_p10) }
 0x181   : > { %v470_v8 = vld [vmem:[#allocation2 + $0x58] sm:$0xff] (%p202_p10)  ;;  %v471_v11 = vld [vmem:[#allocation2 + $0x60] sm:$0xff] (%p202_p10)  ;;  %v472_v12 = vld [vmem:[#allocation2 + $0x68] sm:$0xff] (%p202_p10) }
 0x182   : > { %vm477_vm0 = vcmp.lt.s32.totalorder (%p202_p10), %v476_v51, 4  ;;  %v465_v63 = vld [vmem:[#allocation2 + $0x30] sm:$0xff] (%p202_p10) }
 0x183   : > { %v478_v55 = vsel (%p202_p10), %vm477_vm0, %v459_v50, inf  ;;  %v480_v56 = vsel (%p202_p10), %vm477_vm0, %v461_v52, inf  ;;  %v479_v57 = vsel (%p202_p10), %vm477_vm0, %v460_v53, inf  ;;  %v481_v58 = vsel (%p202_p10), %vm477_vm0, %v462_v54, inf  ;;  %v473_v15 = vld [vmem:[#allocation2 + $0x70] sm:$0xff] (%p202_p10) }
 0x184   : > { %494 = vmin.xlane.f32.xlu0 (%p202_p10), %v478_v55  ;;  %498 = vmin.xlane.f32.xlu1 (%p202_p10), %v480_v56  ;;  %v482_v61 = vsel (%p202_p10), %vm477_vm0, %v463_v59, inf  ;;  %v483_v62 = vsel (%p202_p10), %vm477_vm0, %v464_v60, inf  ;;  %v466_v0 = vld [vmem:[#allocation2 + $0x38] sm:$0xff] (%p202_p10)  ;;  %v484_v1 = vsel (%p202_p10), %vm477_vm0, %v465_v63, inf  ;;  %v486_v5 = vsel (%p202_p10), %vm477_vm0, %v467_v3, inf }
 0x185   : > { %v485_v2 = vsel %vm477_vm0, %v466_v0, inf  ;;  %v487_v6 = vsel %vm477_vm0, %v468_v4, inf  ;;  %v1597_v9 = vsel %vm477_vm0, %v469_v7, inf  ;;  %v1600_v10 = vsel %vm477_vm0, %v470_v8, inf  ;;  %v474_v16 = vld [vmem:[#allocation2 + $0x78] sm:$0xff] }
 0x186   : > { %v1605_v13 = vsel %vm477_vm0, %v471_v11, inf  ;;  %v1608_v14 = vsel %vm477_vm0, %v472_v12, inf  ;;  %v1613_v17 = vsel %vm477_vm0, %v473_v15, inf  ;;  %v1616_v18 = vsel %vm477_vm0, %v474_v16, inf }
 0x188   : > { %496 = vmin.xlane.f32.xlu0 %v479_v57  ;;  %500 = vmin.xlane.f32.xlu1 %v481_v58 }
 0x18c   : > { %502 = vmin.xlane.f32.xlu0 %v482_v61  ;;  %504 = vmin.xlane.f32.xlu1 %v483_v62 }
 0x190   : > { %506 = vmin.xlane.f32.xlu0 %v484_v1  ;;  %508 = vmin.xlane.f32.xlu1 %v485_v2 }
 0x194   : > { %510 = vmin.xlane.f32.xlu0 %v486_v5  ;;  %512 = vmin.xlane.f32.xlu1 %v487_v6 }
 0x198   : > { %514 = vmin.xlane.f32.xlu0 %v1597_v9  ;;  %516 = vmin.xlane.f32.xlu1 %v1600_v10 }
 0x19c   : > { %518 = vmin.xlane.f32.xlu0 %v1605_v13  ;;  %520 = vmin.xlane.f32.xlu1 %v1608_v14 }
 0x1a0   : > { %522 = vmin.xlane.f32.xlu0 %v1613_v17  ;;  %524 = vmin.xlane.f32.xlu1 %v1616_v18 }
 0x211   : > { %v495_v19 = vpop.xlane.xlu0 %494  ;;  %v499_v20 = vpop.xlane.xlu1 %498 }
 0x212   : > { %v526_v21 = vsub.f32 %v495_v19, %v478_v55  ;;  %v528_v22 = vsub.f32 %v499_v20, %v480_v56 }
 0x214   : > { %v542_v23 = vmul.f32 1.442695, %v526_v21  ;;  %v546_v24 = vmul.f32 1.442695, %v528_v22 }
 0x215   : > { %v497_v25 = vpop.xlane.xlu0 %496  ;;  %v501_v26 = vpop.xlane.xlu1 %500 }
 0x216   : > { %1181 = vpow2.f32 %v542_v23  ;;  %v527_v27 = vsub.f32 %v497_v25, %v479_v57  ;;  %v529_v28 = vsub.f32 %v501_v26, %v481_v58 }
 0x217   : > { %1183 = vpow2.f32 %v546_v24 }
 0x218   : > { %v544_v29 = vmul.f32 1.442695, %v527_v27  ;;  %v548_v30 = vmul.f32 1.442695, %v529_v28 }
 0x219   : > { %v503_v31 = vpop.xlane.xlu0 %502  ;;  %v505_v32 = vpop.xlane.xlu1 %504 }
 0x21a   : > { %1185 = vpow2.f32 %v544_v29  ;;  %v530_v33 = vsub.f32 %v503_v31, %v482_v61  ;;  %v531_v34 = vsub.f32 %v505_v32, %v483_v62 }
 0x21b   : > { %1187 = vpow2.f32 %v548_v30 }
 0x21c   : > { %v550_v35 = vmul.f32 1.442695, %v530_v33  ;;  %v552_v36 = vmul.f32 1.442695, %v531_v34 }
 0x21d   : > { %v507_v37 = vpop.xlane.xlu0 %506  ;;  %v509_v38 = vpop.xlane.xlu1 %508 }
 0x21e   : > { %1189 = vpow2.f32 %v550_v35  ;;  %v532_v39 = vsub.f32 %v507_v37, %v484_v1  ;;  %v533_v40 = vsub.f32 %v509_v38, %v485_v2 }
 0x21f   : > { %1191 = vpow2.f32 %v552_v36 }
 0x220   : > { %v1620_v41 = vpop.eup %1181  ;;  %v554_v42 = vmul.f32 1.442695, %v532_v39  ;;  %v556_v43 = vmul.f32 1.442695, %v533_v40 }
 0x221   : > { %574 = vadd.xlane.f32.xlu0 %v1620_v41  ;;  %v511_v44 = vpop.xlane.xlu0 %510  ;;  %v513_v45 = vpop.xlane.xlu1 %512 }
 0x222   : > { %v1623_v46 = vpop.eup %1183  ;;  %1193 = vpow2.f32 %v554_v42  ;;  %v534_v47 = vsub.f32 %v511_v44, %v486_v5  ;;  %v535_v48 = vsub.f32 %v513_v45, %v487_v6 }
 0x223   : > { %1195 = vpow2.f32 %v556_v43 }
 0x224   : > { %v1625_v49 = vpop.eup %1185  ;;  %v558_v50 = vmul.f32 1.442695, %v534_v47  ;;  %v560_v51 = vmul.f32 1.442695, %v535_v48 }
 0x225   : > { %578 = vadd.xlane.f32.xlu0 %v1623_v46  ;;  %576 = vadd.xlane.f32.xlu1 %v1625_v49  ;;  %v515_v52 = vpop.xlane.xlu0 %514  ;;  %v517_v53 = vpop.xlane.xlu1 %516 }
 0x226   : > { %v1629_v54 = vpop.eup %1187  ;;  %1197 = vpow2.f32 %v558_v50  ;;  %v536_v55 = vsub.f32 %v515_v52, %v1597_v9  ;;  %v537_v56 = vsub.f32 %v517_v53, %v1600_v10 }
 0x227   : > { %1199 = vpow2.f32 %v560_v51 }
 0x228   : > { %v1633_v57 = vpop.eup %1189  ;;  %v562_v58 = vmul.f32 1.442695, %v536_v55  ;;  %v564_v59 = vmul.f32 1.442695, %v537_v56 }
 0x229   : > { %580 = vadd.xlane.f32.xlu1 %v1629_v54  ;;  %582 = vadd.xlane.f32.xlu0 %v1633_v57  ;;  %v519_v60 = vpop.xlane.xlu0 %518  ;;  %v521_v61 = vpop.xlane.xlu1 %520 }
 0x22a   : > { %v1637_v62 = vpop.eup %1191  ;;  %1201 = vpow2.f32 %v562_v58  ;;  %v538_v63 = vsub.f32 %v519_v60, %v1605_v13  ;;  %v539_v0 = vsub.f32 %v521_v61, %v1608_v14 }
 0x22b   : > { %1203 = vpow2.f32 %v564_v59 }
 0x22c   : > { %v1641_v1 = vpop.eup %1193  ;;  %v566_v2 = vmul.f32 1.442695, %v538_v63  ;;  %v568_v3 = vmul.f32 1.442695, %v539_v0 }
 0x22d   : > { %584 = vadd.xlane.f32.xlu1 %v1637_v62  ;;  %586 = vadd.xlane.f32.xlu0 %v1641_v1  ;;  %v523_v4 = vpop.xlane.xlu0 %522  ;;  %v525_v5 = vpop.xlane.xlu1 %524 }
 0x22e   : > { %v1645_v6 = vpop.eup %1195  ;;  %1205 = vpow2.f32 %v566_v2  ;;  %v540_v7 = vsub.f32 %v523_v4, %v1613_v17  ;;  %v541_v8 = vsub.f32 %v525_v5, %v1616_v18 }
 0x22f   : > { %1207 = vpow2.f32 %v568_v3 }
 0x230   : > { %v1649_v9 = vpop.eup %1197  ;;  %v570_v10 = vmul.f32 1.442695, %v540_v7  ;;  %v572_v11 = vmul.f32 1.442695, %v541_v8 }
 0x231   : > { %588 = vadd.xlane.f32.xlu1 %v1645_v6  ;;  %590 = vadd.xlane.f32.xlu0 %v1649_v9  ;;  %v1653_v12 = vpop.eup %1199 }
 0x232   : > { %1209 = vpow2.f32 %v570_v10 }
 0x233   : > { %1211 = vpow2.f32 %v572_v11 }
 0x234   : > { %v1655_v13 = vpop.eup %1201 }
 0x235   : > { %592 = vadd.xlane.f32.xlu1 %v1653_v12  ;;  %594 = vadd.xlane.f32.xlu0 %v1655_v13  ;;  %v1659_v14 = vpop.eup %1203 }
 0x238   : > { %v1661_v15 = vpop.eup %1205 }
 0x239   : > { %596 = vadd.xlane.f32.xlu1 %v1659_v14  ;;  %598 = vadd.xlane.f32.xlu0 %v1661_v15  ;;  %v1665_v16 = vpop.eup %1207 }
 0x23c   : > { %v1667_v17 = vpop.eup %1209 }
 0x23d   : > { %600 = vadd.xlane.f32.xlu1 %v1665_v16  ;;  %602 = vadd.xlane.f32.xlu0 %v1667_v17  ;;  %v1671_v18 = vpop.eup %1211 }
 0x241   : > { %604 = vadd.xlane.f32.xlu1 %v1671_v18 }
 0x2ae   : > { %v575_v19 = vpop.xlane.xlu0 %574 }
 0x2af   : > { %1213 = vrcp.f32 %v575_v19 }
 0x2b2   : > { %v577_v20 = vpop.xlane.xlu1 %576  ;;  %v579_v21 = vpop.xlane.xlu0 %578 }
 0x2b3   : > { %1215 = vrcp.f32 %v577_v20 }
 0x2b4   : > { %1217 = vrcp.f32 %v579_v21 }
 0x2b6   : > { %v581_v22 = vpop.xlane.xlu1 %580  ;;  %v583_v23 = vpop.xlane.xlu0 %582 }
 0x2b7   : > { %1219 = vrcp.f32 %v581_v22 }
 0x2b8   : > { %1221 = vrcp.f32 %v583_v23 }
 0x2b9   : > { %v1214_v26 = vpop.eup %1213 }
 0x2ba   : > { %v585_v24 = vpop.xlane.xlu1 %584  ;;  %v587_v25 = vpop.xlane.xlu0 %586  ;;  %v607_v28 = vmul.f32 %v1214_v26, %v1620_v41 }
 0x2bb   : > { %1223 = vrcp.f32 %v585_v24 }
 0x2bc   : > { %1225 = vrcp.f32 %v587_v25 }
 0x2bd   : > { %v1216_v27 = vpop.eup %1215 }
 0x2be   : > { %v609_v29 = vmul.f32 %v1216_v27, %v1625_v49  ;;  %v589_v30 = vpop.xlane.xlu1 %588  ;;  %v591_v31 = vpop.xlane.xlu0 %590 }
 0x2bf   : > { %v1218_v32 = vpop.eup %1217  ;;  %1227 = vrcp.f32 %v589_v30 }
 0x2c0   : > { %v638_v33 = vpack.c.bf16 %v609_v29, %v607_v28  ;;  %1229 = vrcp.f32 %v591_v31  ;;  %v611_v35 = vmul.f32 %v1218_v32, %v1623_v46 }
 0x2c1   : > { %v1220_v34 = vpop.eup %1219 }
 0x2c2   : > { %646 = vst [vmem:[#allocation3] sm:$0xff] %v638_v33  ;;  %v613_v36 = vmul.f32 %v1220_v34, %v1629_v54  ;;  %v593_v37 = vpop.xlane.xlu1 %592  ;;  %v595_v38 = vpop.xlane.xlu0 %594 }
 0x2c3   : > { %v1222_v39 = vpop.eup %1221  ;;  %1231 = vrcp.f32 %v593_v37 }
 0x2c4   : > { %v639_v40 = vpack.c.bf16 %v613_v36, %v611_v35  ;;  %1233 = vrcp.f32 %v595_v38  ;;  %v615_v42 = vmul.f32 %v1222_v39, %v1633_v57 }
 0x2c5   : > { %v1224_v41 = vpop.eup %1223 }
 0x2c6   : > { %647 = vst [vmem:[#allocation3 + $0x8] sm:$0xff] %v639_v40  ;;  %v617_v43 = vmul.f32 %v1224_v41, %v1637_v62  ;;  %v597_v44 = vpop.xlane.xlu1 %596  ;;  %v599_v45 = vpop.xlane.xlu0 %598 }
 0x2c7   : > { %v1226_v47 = vpop.eup %1225  ;;  %1235 = vrcp.f32 %v597_v44 }
 0x2c8   : > { %v640_v48 = vpack.c.bf16 %v617_v43, %v615_v42  ;;  %1237 = vrcp.f32 %v599_v45  ;;  %v619_v49 = vmul.f32 %v1226_v47, %v1641_v1 }
 0x2c9   : > { %v1228_v46 = vpop.eup %1227 }
 0x2ca   : > { %648 = vst [vmem:[#allocation3 + $0x10] sm:$0xff] %v640_v48  ;;  %v621_v50 = vmul.f32 %v1228_v46, %v1645_v6  ;;  %v601_v51 = vpop.xlane.xlu1 %600  ;;  %v603_v52 = vpop.xlane.xlu0 %602 }
 0x2cb   : > { %v1230_v53 = vpop.eup %1229  ;;  %1239 = vrcp.f32 %v601_v51 }
 0x2cc   : > { %v641_v54 = vpack.c.bf16 %v621_v50, %v619_v49  ;;  %1241 = vrcp.f32 %v603_v52  ;;  %v623_v56 = vmul.f32 %v1230_v53, %v1649_v9 }
 0x2cd   : > { %v1232_v55 = vpop.eup %1231 }
 0x2ce   : > { %649 = vst [vmem:[#allocation3 + $0x18] sm:$0xff] %v641_v54  ;;  %v625_v57 = vmul.f32 %v1232_v55, %v1653_v12  ;;  %v605_v58 = vpop.xlane.xlu1 %604  ;;  %v1234_v59 = vpop.eup %1233 }
 0x2cf   : > { %1243 = vrcp.f32 %v605_v58  ;;  %v627_v62 = vmul.f32 %v1234_v59, %v1655_v13 }
 0x2d0   : > { %v642_v60 = vpack.c.bf16 %v625_v57, %v623_v56 }
 0x2d1   : > { %v1236_v61 = vpop.eup %1235 }
 0x2d2   : > { %650 = vst [vmem:[#allocation3 + $0x20] sm:$0xff] %v642_v60  ;;  %v629_v63 = vmul.f32 %v1236_v61, %v1659_v14  ;;  %v1238_v0 = vpop.eup %1237 }
 0x2d3   : > { %v631_v3 = vmul.f32 %v1238_v0, %v1661_v15 }
 0x2d4   : > { %v643_v1 = vpack.c.bf16 %v629_v63, %v627_v62 }
 0x2d5   : > { %v1240_v2 = vpop.eup %1239 }
 0x2d6   : > { %651 = vst [vmem:[#allocation3 + $0x28] sm:$0xff] %v643_v1  ;;  %v633_v4 = vmul.f32 %v1240_v2, %v1665_v16  ;;  %v1242_v5 = vpop.eup %1241 }
 0x2d7   : > { %v635_v8 = vmul.f32 %v1242_v5, %v1667_v17 }
 0x2d8   : > { %v644_v6 = vpack.c.bf16 %v633_v4, %v631_v3 }
 0x2d9   : > { %v1244_v7 = vpop.eup %1243 }
 0x2da   : > { %652 = vst [vmem:[#allocation3 + $0x30] sm:$0xff] %v644_v6  ;;  %v637_v9 = vmul.f32 %v1244_v7, %v1671_v18 }
 0x2dc   : > { %v645_v10 = vpack.c.bf16 %v637_v9, %v635_v8 }
 0x2de   : > { %653 = vst [vmem:[#allocation3 + $0x38] sm:$0xff] %v645_v10 }
 0x2df PF: > { %p1056_p11 = scmp.ne.s32.totalorder %s1357_s14, 1 }
 0x2e0   : > { %v1691_v11 = vld [vmem:[#allocation4 + $0x8] sm:$0xff] (!%p1056_p11)  ;;  %v1693_v12 = vld [vmem:[#allocation4 + $0x18] sm:$0xff] (!%p1056_p11)  ;;  %v1695_v13 = vld [vmem:[#allocation4] sm:$0xff] (!%p1056_p11)  ;;  %v1379_v18 = vmov (!%p1056_p11), 0   ;;  %s832_s14 = sld [smem:[#allocation5]] (!%p1056_p11) }
 0x2e1   : > { %657 = sbr.rel (%p1056_p11) target bundleno = 1015 (0x3f7), region = 48  ;;  %v704_v14 = vpack.c.bf16 (!%p1056_p11), %v1693_v12, %v1691_v11  ;;  %v1699_v15 = vld [vmem:[#allocation4 + $0x10] sm:$0xff] (!%p1056_p11)  ;;  %v1701_v16 = vld [vmem:[#allocation4 + $0x28] sm:$0xff] (!%p1056_p11)  ;;  %v1703_v17 = vld [vmem:[#allocation4 + $0x38] sm:$0xff] (!%p1056_p11)  ;;  %751 = vmatprep.mubr.bf16.mxu0 (!%p1056_p11), %v1379_v18  ;;  %791 = vmatprep.mubr.bf16.mxu1 (!%p1056_p11), %v1379_v18 }
 0x2e2   : > { %v703_v19 = vpack.c.bf16 (!%p1056_p11), %v1699_v15, %v1695_v13  ;;  %v706_v20 = vpack.c.bf16 (!%p1056_p11), %v1703_v17, %v1701_v16  ;;  %v1711_v21 = vld [vmem:[#allocation4 + $0x20] sm:$0xff] (!%p1056_p11)  ;;  %v1713_v22 = vld [vmem:[#allocation4 + $0x30] sm:$0xff] (!%p1056_p11)  ;;  %v1715_v23 = vld [vmem:[#allocation4 + $0x48] sm:$0xff] (!%p1056_p11) }
 0x2e3   : > { %719 = vmatprep.subr.bf16.mxu0 (!%p1056_p11), %v704_v14  ;;  %1081 = vmatprep.subr.bf16.mxu1 (!%p1056_p11), %v704_v14  ;;  %v1717_v24 = vld [vmem:[#allocation4 + $0x58] sm:$0xff] (!%p1056_p11)  ;;  %v705_v25 = vpack.c.bf16 (!%p1056_p11), %v1713_v22, %v1711_v21  ;;  %v1723_v27 = vld [vmem:[#allocation4 + $0x40] sm:$0xff] (!%p1056_p11)  ;;  %v1725_v28 = vld [vmem:[#allocation4 + $0x50] sm:$0xff] (!%p1056_p11) }
 0x2e4   : > { %720 = vmatpush1.bf16.msra.mxu0 (!%p1056_p11), %v703_v19  ;;  %1089 = vmatpush1.bf16.msra.mxu1 (!%p1056_p11), %v703_v19  ;;  %v708_v26 = vpack.c.bf16 (!%p1056_p11), %v1717_v24, %v1715_v23  ;;  %v1727_v29 = vld [vmem:[#allocation4 + $0x68] sm:$0xff] (!%p1056_p11)  ;;  %v1729_v30 = vld [vmem:[#allocation4 + $0x78] sm:$0xff] (!%p1056_p11)  ;;  %v707_v31 = vpack.c.bf16 (!%p1056_p11), %v1725_v28, %v1723_v27  ;;  %v1735_v33 = vld [vmem:[#allocation4 + $0x60] sm:$0xff] (!%p1056_p11) }
 0x2e5   : > { %721 = vmatprep.subr.bf16.mxu0 (!%p1056_p11), %v706_v20  ;;  %1082 = vmatprep.subr.bf16.mxu1 (!%p1056_p11), %v706_v20  ;;  %v710_v32 = vpack.c.bf16 (!%p1056_p11), %v1729_v30, %v1727_v29  ;;  %v1737_v34 = vld [vmem:[#allocation4 + $0x70] sm:$0xff] (!%p1056_p11)  ;;  %v1739_v35 = vld [vmem:[#allocation4 + $0x88] sm:$0xff] (!%p1056_p11)  ;;  %v1741_v36 = vld [vmem:[#allocation4 + $0x98] sm:$0xff] (!%p1056_p11) }
 0x2e6   : > { %v709_v37 = vpack.c.bf16 (!%p1056_p11), %v1737_v34, %v1735_v33  ;;  %v712_v38 = vpack.c.bf16 (!%p1056_p11), %v1741_v36, %v1739_v35  ;;  %v1747_v39 = vld [vmem:[#allocation4 + $0x80] sm:$0xff] (!%p1056_p11)  ;;  %v1749_v40 = vld [vmem:[#allocation4 + $0x90] sm:$0xff] (!%p1056_p11)  ;;  %v1751_v41 = vld [vmem:[#allocation4 + $0xa8] sm:$0xff] (!%p1056_p11)  ;;  %v1795_v4 = vstv (!%p1056_p11), %s832_s14 }
 0x2e7   : > { %v1753_v42 = vld [vmem:[#allocation4 + $0xb8] sm:$0xff] (!%p1056_p11)  ;;  %v711_v43 = vpack.c.bf16 (!%p1056_p11), %v1749_v40, %v1747_v39  ;;  %v1759_v45 = vld [vmem:[#allocation4 + $0xa0] sm:$0xff] (!%p1056_p11)  ;;  %v1761_v47 = vld [vmem:[#allocation4 + $0xb0] sm:$0xff] (!%p1056_p11) }
 0x2e8   : > { %722 = vmatpush1.bf16.msra.mxu0 %v705_v25  ;;  %1090 = vmatpush1.bf16.msra.mxu1 %v705_v25  ;;  %v714_v44 = vpack.c.bf16 %v1753_v42, %v1751_v41  ;;  %v1763_v48 = vld [vmem:[#allocation4 + $0xc8] sm:$0xff]  ;;  %v1765_v46 = vld [vmem:[#allocation4 + $0xd8] sm:$0xff]  ;;  %v713_v49 = vpack.c.bf16 %v1761_v47, %v1759_v45  ;;  %v1771_v51 = vld [vmem:[#allocation4 + $0xc0] sm:$0xff] }
 0x2e9   : > { %723 = vmatprep.subr.bf16.mxu0 %v708_v26  ;;  %1083 = vmatprep.subr.bf16.mxu1 %v708_v26  ;;  %v716_v50 = vpack.c.bf16 %v1765_v46, %v1763_v48  ;;  %v1773_v52 = vld [vmem:[#allocation4 + $0xd0] sm:$0xff]  ;;  %v1775_v53 = vld [vmem:[#allocation4 + $0xe8] sm:$0xff]  ;;  %v1777_v54 = vld [vmem:[#allocation4 + $0xf8] sm:$0xff] }
 0x2ea   : > { %v715_v55 = vpack.c.bf16 %v1773_v52, %v1771_v51  ;;  %v718_v56 = vpack.c.bf16 %v1777_v54, %v1775_v53  ;;  %v1783_v57 = vld [vmem:[#allocation4 + $0xe0] sm:$0xff]  ;;  %v1785_v58 = vld [vmem:[#allocation4 + $0xf0] sm:$0xff]  ;;  %v696_v62 = vld [vmem:[#allocation3 + $0x8] sm:$0xff] }
 0x2eb   : > { %v717_v59 = vpack.c.bf16 %v1785_v58, %v1783_v57  ;;  %v695_v60 = vld [vmem:[#allocation3] sm:$0xff]  ;;  %v700_v63 = vld [vmem:[#allocation3 + $0x28] sm:$0xff]  ;;  %v697_v0 = vld [vmem:[#allocation3 + $0x10] sm:$0xff] }
 0x2ec   : > { %724 = vmatpush1.bf16.msra.mxu0 %v707_v31  ;;  %1091 = vmatpush1.bf16.msra.mxu1 %v707_v31  ;;  %v699_v61 = vld [vmem:[#allocation3 + $0x20] sm:$0xff]  ;;  %v701_v1 = vld [vmem:[#allocation3 + $0x30] sm:$0xff]  ;;  %v698_v2 = vld [vmem:[#allocation3 + $0x18] sm:$0xff] }
 0x2ed   : > { %725 = vmatprep.subr.bf16.mxu0 %v710_v32  ;;  %1084 = vmatprep.subr.bf16.mxu1 %v710_v32  ;;  %v702_v3 = vld [vmem:[#allocation3 + $0x38] sm:$0xff] }
 0x2f0   : > { %726 = vmatpush1.bf16.msra.mxu0 %v709_v37  ;;  %1092 = vmatpush1.bf16.msra.mxu1 %v709_v37 }
 0x2f1   : > { %727 = vmatprep.subr.bf16.mxu0 %v712_v38  ;;  %1085 = vmatprep.subr.bf16.mxu1 %v712_v38 }
 0x2f4   : > { %728 = vmatpush1.bf16.msra.mxu0 %v711_v43  ;;  %1093 = vmatpush1.bf16.msra.mxu1 %v711_v43 }
 0x2f5   : > { %729 = vmatprep.subr.bf16.mxu0 %v714_v44  ;;  %1086 = vmatprep.subr.bf16.mxu1 %v714_v44 }
 0x2f8   : > { %730 = vmatpush1.bf16.msra.mxu0 %v713_v49  ;;  %1094 = vmatpush1.bf16.msra.mxu1 %v713_v49 }
 0x2f9   : > { %731 = vmatprep.subr.bf16.mxu0 %v716_v50  ;;  %1087 = vmatprep.subr.bf16.mxu1 %v716_v50 }
 0x2fc   : > { %732 = vmatpush1.bf16.msra.mxu0 %v715_v55  ;;  %1095 = vmatpush1.bf16.msra.mxu1 %v715_v55 }
 0x2fd   : > { %733 = vmatprep.subr.bf16.mxu0 %v718_v56  ;;  %1088 = vmatprep.subr.bf16.mxu1 %v718_v56 }
 0x300   : > { %734 = vmatpush1.bf16.msra.mxu0 %v717_v59  ;;  %1096 = vmatpush1.bf16.msra.mxu1 %v717_v59 }
 0x303   : > { %752 = vmatmul.mubr.bf16.vlgmr.msra.gmra.mrb[0].mxu0 %v695_v60  ;;  %792 = vmatmul.mubr.bf16.vlgmr.msra.gmra.mrb[0].mxu1 %v699_v61 }
 0x304   : > { %761 = vmatprep.mubr.bf16.mxu0 %v1379_v18  ;;  %801 = vmatprep.mubr.bf16.mxu1 %v1379_v18 }
 0x30b   : > { %762 = vmatmul.mubr.bf16.gmra.mrb[4].mxu0 %v696_v62  ;;  %802 = vmatmul.mubr.bf16.gmra.mrb[4].mxu1 %v700_v63 }
 0x30c   : > { %771 = vmatprep.mubr.bf16.mxu0 %v1379_v18  ;;  %811 = vmatprep.mubr.bf16.mxu1 %v1379_v18 }
 0x313   : > { %772 = vmatmul.mubr.bf16.gmra.mrb[8].mxu0 %v697_v0  ;;  %812 = vmatmul.mubr.bf16.gmra.mrb[8].mxu1 %v701_v1 }
 0x314   : > { %781 = vmatprep.mubr.bf16.mxu0 %v1379_v18  ;;  %821 = vmatprep.mubr.bf16.mxu1 %v1379_v18 }
 0x31b   : > { %782 = vmatmul.mubr.bf16.gmra.mrb[12].mxu0 %v698_v2  ;;  %822 = vmatmul.mubr.bf16.gmra.mrb[12].mxu1 %v702_v3 }
 0x3d6   : > { %v753_v5 = vpop.f32.mrb[0].mxu0  ;;  %v793_v6 = vpop.f32.mrb[0].mxu1 }
 0x3d7   : > { %v834_v7 = vmul.f32 %v1795_v4, %v753_v5  ;;  %v850_v8 = vmul.f32 %v1795_v4, %v793_v6  ;;  %v755_v9 = vpop.f32.mrb[1].mxu0  ;;  %v795_v10 = vpop.f32.mrb[1].mxu1 }
 0x3d8   : > { %v835_v14 = vmul.f32 %v1795_v4, %v755_v9  ;;  %v851_v18 = vmul.f32 %v1795_v4, %v795_v10  ;;  %v757_v19 = vpop.f32.mrb[2].mxu0  ;;  %v797_v20 = vpop.f32.mrb[2].mxu1 }
 0x3d9   : > { %v866_v25 = vadd.f32 %v834_v7, %v1695_v13  ;;  %v882_v26 = vadd.f32 %v850_v8, %v1747_v39  ;;  %v836_v31 = vmul.f32 %v1795_v4, %v757_v19  ;;  %v852_v32 = vmul.f32 %v1795_v4, %v797_v20  ;;  %v759_v37 = vpop.f32.mrb[3].mxu0  ;;  %v799_v38 = vpop.f32.mrb[3].mxu1 }
 0x3da   : > { %v867_v43 = vadd.f32 %v835_v14, %v1691_v11  ;;  %v883_v44 = vadd.f32 %v851_v18, %v1739_v35  ;;  %v837_v49 = vmul.f32 %v1795_v4, %v759_v37  ;;  %v853_v13 = vmul.f32 %v1795_v4, %v799_v38 }
 0x3db   : > { %898 = vst [vmem:[%s1537_s6] sm:$0xff] %v866_v25  ;;  %914 = vst [vmem:[%s1537_s6 + $0x80] sm:$0xff] %v882_v26  ;;  %v868_v39 = vadd.f32 %v836_v31, %v1699_v15  ;;  %v884_v50 = vadd.f32 %v852_v32, %v1749_v40 }
 0x3dc   : > { %899 = vst [vmem:[%s1537_s6 + $0x8] sm:$0xff] %v867_v43  ;;  %915 = vst [vmem:[%s1537_s6 + $0x88] sm:$0xff] %v883_v44  ;;  %v869_v55 = vadd.f32 %v837_v49, %v1693_v12  ;;  %v885_v56 = vadd.f32 %v853_v13, %v1741_v36 }
 0x3dd   : > { %900 = vst [vmem:[%s1537_s6 + $0x10] sm:$0xff] %v868_v39  ;;  %916 = vst [vmem:[%s1537_s6 + $0x90] sm:$0xff] %v884_v50 }
 0x3de   : > { %901 = vst [vmem:[%s1537_s6 + $0x18] sm:$0xff] %v869_v55  ;;  %917 = vst [vmem:[%s1537_s6 + $0x98] sm:$0xff] %v885_v56  ;;  %v763_v11 = vpop.f32.mrb[4].mxu0  ;;  %v803_v35 = vpop.f32.mrb[4].mxu1 }
 0x3df   : > { %v838_v59 = vmul.f32 %v1795_v4, %v763_v11  ;;  %v854_v60 = vmul.f32 %v1795_v4, %v803_v35  ;;  %v765_v61 = vpop.f32.mrb[5].mxu0  ;;  %v805_v15 = vpop.f32.mrb[5].mxu1 }
 0x3e0   : > { %v839_v40 = vmul.f32 %v1795_v4, %v765_v61  ;;  %v855_v12 = vmul.f32 %v1795_v4, %v805_v15  ;;  %v767_v62 = vpop.f32.mrb[6].mxu0  ;;  %v807_v36 = vpop.f32.mrb[6].mxu1 }
 0x3e1   : > { %v870_v63 = vadd.f32 %v838_v59, %v1711_v21  ;;  %v886_v0 = vadd.f32 %v854_v60, %v1759_v45  ;;  %v840_v1 = vmul.f32 %v1795_v4, %v767_v62  ;;  %v856_v2 = vmul.f32 %v1795_v4, %v807_v36  ;;  %v769_v3 = vpop.f32.mrb[7].mxu0  ;;  %v809_v5 = vpop.f32.mrb[7].mxu1 }
 0x3e2   : > { %v871_v6 = vadd.f32 %v839_v40, %v1701_v16  ;;  %v887_v7 = vadd.f32 %v855_v12, %v1751_v41  ;;  %v841_v8 = vmul.f32 %v1795_v4, %v769_v3  ;;  %v857_v21 = vmul.f32 %v1795_v4, %v809_v5 }
 0x3e3   : > { %902 = vst [vmem:[%s1537_s6 + $0x20] sm:$0xff] %v870_v63  ;;  %918 = vst [vmem:[%s1537_s6 + $0xa0] sm:$0xff] %v886_v0  ;;  %v872_v45 = vadd.f32 %v840_v1, %v1713_v22  ;;  %v888_v9 = vadd.f32 %v856_v2, %v1761_v47 }
 0x3e4   : > { %903 = vst [vmem:[%s1537_s6 + $0x28] sm:$0xff] %v871_v6  ;;  %919 = vst [vmem:[%s1537_s6 + $0xa8] sm:$0xff] %v887_v7  ;;  %v873_v10 = vadd.f32 %v841_v8, %v1703_v17  ;;  %v889_v14 = vadd.f32 %v857_v21, %v1753_v42 }
 0x3e5   : > { %904 = vst [vmem:[%s1537_s6 + $0x30] sm:$0xff] %v872_v45  ;;  %920 = vst [vmem:[%s1537_s6 + $0xb0] sm:$0xff] %v888_v9 }
 0x3e6   : > { %905 = vst [vmem:[%s1537_s6 + $0x38] sm:$0xff] %v873_v10  ;;  %921 = vst [vmem:[%s1537_s6 + $0xb8] sm:$0xff] %v889_v14  ;;  %v773_v16 = vpop.f32.mrb[8].mxu0  ;;  %v813_v41 = vpop.f32.mrb[8].mxu1 }
 0x3e7   : > { %v842_v18 = vmul.f32 %v1795_v4, %v773_v16  ;;  %v858_v19 = vmul.f32 %v1795_v4, %v813_v41  ;;  %v775_v20 = vpop.f32.mrb[9].mxu0  ;;  %v815_v22 = vpop.f32.mrb[9].mxu1 }
 0x3e8   : > { %v843_v47 = vmul.f32 %v1795_v4, %v775_v20  ;;  %v859_v17 = vmul.f32 %v1795_v4, %v815_v22  ;;  %v777_v25 = vpop.f32.mrb[10].mxu0  ;;  %v817_v42 = vpop.f32.mrb[10].mxu1 }
 0x3e9   : > { %v874_v26 = vadd.f32 %v842_v18, %v1723_v27  ;;  %v890_v31 = vadd.f32 %v858_v19, %v1771_v51  ;;  %v844_v32 = vmul.f32 %v1795_v4, %v777_v25  ;;  %v860_v37 = vmul.f32 %v1795_v4, %v817_v42  ;;  %v779_v38 = vpop.f32.mrb[11].mxu0  ;;  %v819_v43 = vpop.f32.mrb[11].mxu1 }
 0x3ea   : > { %v875_v44 = vadd.f32 %v843_v47, %v1715_v23  ;;  %v891_v49 = vadd.f32 %v859_v17, %v1763_v48  ;;  %v845_v13 = vmul.f32 %v1795_v4, %v779_v38  ;;  %v861_v27 = vmul.f32 %v1795_v4, %v819_v43 }
 0x3eb   : > { %906 = vst [vmem:[%s1537_s6 + $0x40] sm:$0xff] %v874_v26  ;;  %922 = vst [vmem:[%s1537_s6 + $0xc0] sm:$0xff] %v890_v31  ;;  %v876_v51 = vadd.f32 %v844_v32, %v1725_v28  ;;  %v892_v39 = vadd.f32 %v860_v37, %v1773_v52 }
 0x3ec   : > { %907 = vst [vmem:[%s1537_s6 + $0x48] sm:$0xff] %v875_v44  ;;  %923 = vst [vmem:[%s1537_s6 + $0xc8] sm:$0xff] %v891_v49  ;;  %v877_v50 = vadd.f32 %v845_v13, %v1717_v24  ;;  %v893_v55 = vadd.f32 %v861_v27, %v1765_v46 }
 0x3ed   : > { %908 = vst [vmem:[%s1537_s6 + $0x50] sm:$0xff] %v876_v51  ;;  %924 = vst [vmem:[%s1537_s6 + $0xd0] sm:$0xff] %v892_v39 }
 0x3ee   : > { %909 = vst [vmem:[%s1537_s6 + $0x58] sm:$0xff] %v877_v50  ;;  %925 = vst [vmem:[%s1537_s6 + $0xd8] sm:$0xff] %v893_v55  ;;  %v783_v23 = vpop.f32.mrb[12].mxu0  ;;  %v823_v48 = vpop.f32.mrb[12].mxu1 }
 0x3ef   : > { %v846_v56 = vmul.f32 %v1795_v4, %v783_v23  ;;  %v862_v11 = vmul.f32 %v1795_v4, %v823_v48  ;;  %v785_v35 = vpop.f32.mrb[13].mxu0  ;;  %v825_v28 = vpop.f32.mrb[13].mxu1 }
 0x3f0   : > { %v847_v52 = vmul.f32 %v1795_v4, %v785_v35  ;;  %v863_v24 = vmul.f32 %v1795_v4, %v825_v28  ;;  %v787_v59 = vpop.f32.mrb[14].mxu0  ;;  %v827_v46 = vpop.f32.mrb[14].mxu1 }
 0x3f1   : > { %v878_v60 = vadd.f32 %v846_v56, %v1735_v33  ;;  %v894_v61 = vadd.f32 %v862_v11, %v1783_v57  ;;  %v848_v15 = vmul.f32 %v1795_v4, %v787_v59  ;;  %v864_v40 = vmul.f32 %v1795_v4, %v827_v46  ;;  %v789_v12 = vpop.f32.mrb[15].mxu0  ;;  %v829_v62 = vpop.f32.mrb[15].mxu1 }
 0x3f2   : > { %v879_v36 = vadd.f32 %v847_v52, %v1727_v29  ;;  %v895_v63 = vadd.f32 %v863_v24, %v1775_v53  ;;  %v849_v0 = vmul.f32 %v1795_v4, %v789_v12  ;;  %v865_v33 = vmul.f32 %v1795_v4, %v829_v62 }
 0x3f3   : > { %910 = vst [vmem:[%s1537_s6 + $0x60] sm:$0xff] %v878_v60  ;;  %926 = vst [vmem:[%s1537_s6 + $0xe0] sm:$0xff] %v894_v61  ;;  %v880_v57 = vadd.f32 %v848_v15, %v1737_v34  ;;  %v896_v1 = vadd.f32 %v864_v40, %v1785_v58 }
 0x3f4   : > { %911 = vst [vmem:[%s1537_s6 + $0x68] sm:$0xff] %v879_v36  ;;  %927 = vst [vmem:[%s1537_s6 + $0xe8] sm:$0xff] %v895_v63  ;;  %v881_v2 = vadd.f32 %v849_v0, %v1729_v30  ;;  %v897_v3 = vadd.f32 %v865_v33, %v1777_v54 }
 0x3f5   : > { %912 = vst [vmem:[%s1537_s6 + $0x70] sm:$0xff] %v880_v57  ;;  %928 = vst [vmem:[%s1537_s6 + $0xf0] sm:$0xff] %v896_v1 }
 0x3f6   : > { %913 = vst [vmem:[%s1537_s6 + $0x78] sm:$0xff] %v881_v2  ;;  %929 = vst [vmem:[%s1537_s6 + $0xf8] sm:$0xff] %v897_v3 }
 0x3f7 PF: > { %s1064_s24 = sshll.u32 %s1361_s15, 12  ;;  %s947_s30 = sshll.u32 %s1537_s6, 4  ;;  %s1900_s30 = int_to_ptr.vmem [resolvable:$true] %s947_s30 }
 0x3f8   : > { %s1897_s10 = scalar_lea.hbm %s1956_s2, %s1064_s24  ;;  %s931_s28 = scalar_lea.sflag [#allocation8], %s1526_s19 }
 0x3f9   : > { %s1275_s3 = scalar_lea.vmem %s1900_s30, 4096  ;;  %p1964_p12 = scmp.ne.s32.totalorder %s1960_s25, 0 }
 0x3fa   : > { %p1276_p0 = scmp.ne.s32.totalorder %s1900_s30, %s1275_s3  ;;  %s1380_s4 = smov [#allocation9]  }
 0x3fb   : > { %s1279_s5 = sshll.u32 %s1380_s4, 4  ;;  %s1280_s5 = int_to_ptr.vmem [resolvable:$false] %s1279_s5 }
 0x3fc   : > { %p1277_p13 = pnand %p1276_p0, %p1964_p12  ;;  %s1281_s15 = scalar_lea.vmem %s1280_s5, 8192 }
 0x3fd   : > { %p1282_p5 = scmp.lt.s32.totalorder %s1900_s30, %s1280_s5  ;;  %p1283_p3 = scmp.lt.s32.totalorder %s1281_s15, %s1275_s3 }
 0x3fe   : > { %p1278_p2 = pneg %p1277_p13 }
 0x3ff   : > { %p1284_p7 = por %p1283_p3, %p1282_p5 }
 0x401   : > { %p1285_p8 = pnand %p1284_p7, %p1278_p2 }
 0x403   : > { %1288 = shalt.err (!%p1285_p8)
}
 0x404   : > { %s1289_s7 = scalar_lea.hbm %s1897_s10, 4096  ;;  %s1293_s23 = scalar_lea.hbm %s1956_s2, 8192 }
 0x405   : > { %p1290_p1 = scmp.ne.s32.totalorder %s1897_s10, %s1289_s7  ;;  %p1294_p10 = scmp.lt.u32.totalorder %s1897_s10, %s1956_s2 }
 0x406   : > { %p1295_p9 = scmp.lt.u32.totalorder %s1293_s23, %s1289_s7  ;;  %p1297_p0 = scmp.lt.u32.totalorder %s1289_s7, %s1897_s10 }
 0x407   : > { %p1291_p4 = pnand %p1290_p1, %p1964_p12 }
 0x408   : > { %p1296_p11 = por %p1295_p9, %p1294_p10 }
 0x409   : > { %p1292_p6 = pneg %p1291_p4 }
 0x40a   : > { %p1298_p13 = por %p1297_p0, %p1296_p11 }
 0x40c   : > { %p1299_p2 = pnand %p1298_p13, %p1292_p6 }
 0x40e   : > { %1302 = shalt.err (!%p1299_p2)
}
 0x40f   : > { %s1381_s14 = smov 256   ;;  %s1382_s24 = smov 16  }
 0x410   : > { %1099 = dma.vmem_to_hbm [thread:$0]  (%p1964_p12), %s1900_s30, 4096, %s1897_s10, %s931_s28, %s1381_s14, %s1381_s14, %s1382_s24  }
 0x411 PF: > { %p1110_p5 = scmp.ge.s32.totalorder %s1373_s18, 2  ;;  %s962_s8 = sand.u32 1, %s1345_s11  }
 0x412   : > { %p1965_p3 = scmp.ne.s32.totalorder %s1961_s27, 0  ;;  %s963_s9 = scalar_lea.sflag [#allocation8], %s962_s8 }
 0x414   : > { %p1106_p7 = pnand %p1110_p5, %p1965_p3 }
 0x416   : > { %1340 = dma.done.wait (!%p1106_p7), %s963_s9, 4096  }
 0x417   : > { %1342 = vsyncadd (!%p1106_p7), %s963_s9, 4294963200  ;;  %s19_s18 = sadd.s32 1, %s1373_s18   ;;  %s1966_s11 = smov %s1349_s12 }
 0x418   : > { %p16_p8 = scmp.ge.s32.totalorder %s19_s18, 6   ;;  %s1967_s12 = smov %s1353_s13 }
 0x419   : > { %s1968_s13 = smov %s1477_s29  ;;  %s1969_s14 = smov %s1365_s16 }
 0x41a   : > { %s1970_s15 = smov %s1369_s17  ;;  %s1971_s16 = smov %s1974_s20 }
 0x41b   : > { %s1972_s17 = smov %s1978_s21  ;;  %18 = sbr.rel (!%p16_p8) target bundleno = 9 (0x9), region = 91 }
 0x422   :  { %968 = vsyncpa [#allocation7], 1 }
 0x423   :  { %970 = vsyncpa [#allocation7 + $0x1], 1 }
 0x424   :  { %971 = vsyncpa [#allocation8], 1 }
 0x425   :  { %973 = vsyncpa [#allocation8 + $0x1], 1 }

</bundles_post_ra>
